<compile_context>
chip_gen: v7x
topology: tpu7x:2x2x1
jax: 0.10.0
libtpu: 0.0.40
codegen_flags: <defaults>
</compile_context>

<pallas_src>
import functools

import jax
import jax.numpy as jnp
from jax import lax
from jax.experimental import pallas as pl
from jax.experimental.pallas import tpu as pltpu


def projection_head_kernel(x_ref, w1_ref, b1_ref, w2_ref, b2_ref,
                           gamma_ref, beta_ref, o_ref, *,
                           true_p, eps, approximate_gelu):
    # ---- Linear 1: x @ W1 + b1 (bf16 MXU inputs, f32 accumulation). ----
    # Cast x -> bf16 on the VPU here (hidden under the MXU) instead of paying
    # a separate XLA pass over x in the wrapper.
    x_bf = x_ref[...].astype(jnp.bfloat16)
    projected = jnp.dot(x_bf, w1_ref[...], preferred_element_type=jnp.float32)
    projected = projected + b1_ref[...]

    # ---- GELU ----
    if approximate_gelu:
        # tanh approximation -> EUP (otherwise-idle bundle slot).
        c = 0.7978845608028654  # sqrt(2/pi)
        h = 0.5 * projected * (
            1.0 + jnp.tanh(c * (projected + 0.044715 * projected * projected * projected)))
    else:
        # exact (erf) GELU — matches torch nn.GELU() default.
        h = 0.5 * projected * (1.0 + lax.erf(projected * 0.7071067811865476))

    # ---- Linear 2: h @ W2 + b2 (MXU) ----
    y = jnp.dot(h.astype(w2_ref.dtype), w2_ref[...],
                preferred_element_type=jnp.float32)
    y = y + b2_ref[...]

    # ---- Dropout: eval-mode identity (inference semantics) ----
    # TODO(synk): training-mode dropout would use pltpu.prng_seed/prng_random_bits.

    # ---- residual ----
    # NOTE: `projected` (f32) is the largest live intermediate across dot #2;
    # at these tile sizes it fits comfortably, so it stays f32 for accuracy.
    y = y + projected

    # ---- LayerNorm over the TRUE feature width (one-pass variance) ----
    # Padded lane columns of y are exactly zero (weights/biases zero-padded),
    # so full-lane sums equal true-feature sums; divide by true_p.
    inv_p = 1.0 / true_p
    mean = jnp.sum(y, axis=-1, keepdims=True) * inv_p
    mean_sq = jnp.sum(y * y, axis=-1, keepdims=True) * inv_p
    var = jnp.maximum(mean_sq - mean * mean, 0.0)   # clamp: no NaN on near-constant rows
    y = (y - mean) * lax.rsqrt(var + eps)
    # Padded gamma/beta columns are zero, so padded output lanes stay zero.
    o_ref[...] = (y * gamma_ref[...] + beta_ref[...]).astype(o_ref.dtype)


def prepare_projection_head_params(w1, b1, w2, b2, gamma, beta):
    """One-time parameter preparation (hoisted out of the per-call path).

    Pads the feature dim up to a multiple of 128 lanes (zero padding — required
    for the in-kernel LayerNorm stats to stay exact) and casts matmul weights
    to bf16. Returns (params_dict, P, Pp).
    """
    E, P = w1.shape
    Pp = ((P + 127) // 128) * 128

    def pad_feat(a, rows=None, dtype=jnp.float32):
        a = jnp.asarray(a, jnp.float32).reshape((-1, a.shape[-1]))
        out_rows = a.shape[0] if rows is None else rows
        buf = jnp.zeros((out_rows, Pp), dtype)
        return buf.at[:a.shape[0], :a.shape[1]].set(a.astype(dtype))

    params = {
        "w1": pad_feat(w1, dtype=jnp.bfloat16),          # (E, Pp)   bf16
        "b1": pad_feat(b1),                              # (1, Pp)   f32
        "w2": pad_feat(w2, rows=Pp, dtype=jnp.bfloat16),  # (Pp, Pp)  bf16
        "b2": pad_feat(b2),
        "gamma": pad_feat(gamma),
        "beta": pad_feat(beta),
    }
    return params, P, Pp


def _pick_block_n(N):
    """Large row tiles to amortize ~0.35us/step overhead, but keep >=2 grid
    steps so the 'parallel' row axis can shard across v7x's 2 TensorCores."""
    n8 = ((N + 7) // 8) * 8
    for t in (512, 256, 128):
        if n8 >= 2 * t:
            return t
    if n8 >= 16:
        return max(8, ((n8 // 2) // 8) * 8)   # two steps for small N
    return max(n8, 8)


def _vmem_bytes(block_n, E, Pp, weight_bufs):
    weights = ((E + Pp) * Pp * 2 + 4 * Pp * 4) * weight_bufs
    io = (block_n * E * 4 + block_n * Pp * 4) * 2        # double-buffered x / out tiles
    live = block_n * Pp * 4 * 6                          # f32 intermediates (generous)
    return weights + io + live


def projection_head(x, params, true_p, *, eps=1e-5, block_n=None,
                    approximate_gelu=False):
    """x: (N, E) f32. params: output of prepare_projection_head_params."""
    N, E = x.shape
    Pp = params["w1"].shape[1]
    P = true_p
    out_dtype = x.dtype

    # ---- row tiling ----
    if block_n is None:
        block_n = _pick_block_n(N)
        while block_n > 128 and _vmem_bytes(block_n, E, Pp, 2) > 40 * (1 << 20):
            block_n //= 2
    else:
        block_n = max(8, (block_n // 8) * 8)
        block_n = min(block_n, ((N + 7) // 8) * 8)

    Np = pl.cdiv(N, block_n) * block_n
    xp = x if Np == N else jnp.pad(x, ((0, Np - N), (0, 0)))   # only pad when needed
    grid = (Np // block_n,)

    # VMEM limit: enough for the buffers + headroom, capped at 48 MiB so we
    # stay well under v7x's 64 MiB physical VMEM (v5e/v6e have 128 MiB).
    vmem_limit = int(min(max(_vmem_bytes(block_n, E, Pp, 2) + 16 * (1 << 20),
                             32 * (1 << 20)),
                         48 * (1 << 20)))

    kernel = functools.partial(projection_head_kernel, true_p=float(P),
                               eps=eps, approximate_gelu=approximate_gelu)

    def _call(single_buffer_weights):
        def inv_spec(shape):
            # Grid-invariant operands: single-buffer (no point double-buffering
            # a weight that never changes across the row grid).
            if single_buffer_weights:
                return pl.BlockSpec(shape, lambda i: (0, 0),
                                    pipeline_mode=pl.Buffered(1))
            return pl.BlockSpec(shape, lambda i: (0, 0))

        return pl.pallas_call(
            kernel,
            out_shape=jax.ShapeDtypeStruct((Np, Pp), out_dtype),
            grid_spec=pltpu.PrefetchScalarGridSpec(
                num_scalar_prefetch=0,
                grid=grid,
                in_specs=[
                    pl.BlockSpec((block_n, E), lambda i: (i, 0)),  # x row tile (f32)
                    inv_spec((E, Pp)),                             # W1 (resident)
                    inv_spec((1, Pp)),                             # b1
                    inv_spec((Pp, Pp)),                            # W2 (resident)
                    inv_spec((1, Pp)),                             # b2
                    inv_spec((1, Pp)),                             # gamma
                    inv_spec((1, Pp)),                             # beta
                ],
                out_specs=pl.BlockSpec((block_n, Pp), lambda i: (i, 0)),
            ),
            compiler_params=pltpu.CompilerParams(
                dimension_semantics=("parallel",),
                vmem_limit_bytes=vmem_limit,
            ),
        )(xp, params["w1"], params["b1"], params["w2"], params["b2"],
          params["gamma"], params["beta"])

    try:
        out = _call(single_buffer_weights=True)
    except Exception:
        # pl.Buffered(1) not supported on this jax/backend combo -> default buffering.
        out = _call(single_buffer_weights=False)

    # Only pay the slicing pass when the shapes actually needed padding.
    if Np == N and Pp == P:
        return out
    return out[:N, :P]


def xavier_uniform(key, fan_in, fan_out, shape):
    bound = jnp.sqrt(6.0 / (fan_in + fan_out))
    return jax.random.uniform(key, shape, jnp.float32, -bound, bound)


def reference(x, w1, b1, w2, b2, gamma, beta):
    projected = x @ w1 + b1
    h = jax.nn.gelu(projected, approximate=False)
    h = h @ w2 + b2
    y = h + projected
    mean = jnp.mean(y, axis=-1, keepdims=True)
    var = jnp.mean((y - mean) ** 2, axis=-1, keepdims=True)
    y = (y - mean) / jnp.sqrt(var + 1e-5)
    return y * gamma + beta


if __name__ == "__main__":
    N = 256          # batch of embeddings (2 parallel grid steps of 128 rows)
    E = 32           # embedding_dim
    P = 64           # projection_dim (CFG.projection_dim) -> padded to 128 lanes

    key = jax.random.PRNGKey(0)
    kx, kw1, kb1, kw2, kb2 = jax.random.split(key, 5)

    x = jax.random.normal(kx, (N, E), jnp.float32)

    # nn.Linear(E, P): weight (P, E) xavier_uniform; stored transposed (E, P).
    w1 = xavier_uniform(kw1, E, P, (E, P))
    b1 = jax.random.uniform(kb1, (1, P), jnp.float32,
                            -1.0 / jnp.sqrt(E), 1.0 / jnp.sqrt(E))
    # nn.Linear(P, P)
    w2 = xavier_uniform(kw2, P, P, (P, P))
    b2 = jax.random.uniform(kb2, (1, P), jnp.float32,
                            -1.0 / jnp.sqrt(P), 1.0 / jnp.sqrt(P))
    # nn.LayerNorm(P) defaults
    gamma = jnp.ones((1, P), jnp.float32)
    beta = jnp.zeros((1, P), jnp.float32)

    # One-time parameter prep (padding + bf16 cast) — not paid per call.
    params, true_p, _ = prepare_projection_head_params(w1, b1, w2, b2, gamma, beta)

    out = projection_head(x, params, true_p)
    out = jax.block_until_ready(out)

    ref = reference(x, w1, b1, w2, b2, gamma, beta)
    assert out.shape == (N, P)
    # bf16 MXU inputs (f32 accumulation) -> loosened tolerance vs f32 reference.
    assert jnp.allclose(out, ref, atol=3e-2, rtol=3e-2)

    print("KERNEL_OK")
</pallas_src>

<mosaic_0001>
module attributes {stable_mosaic.version = 11 : i64} {
  func.func @projection_head_kernel(%arg0: i32, %arg1: memref<128x32xf32, #tpu.memory_space<vmem>>, %arg2: memref<32x128xbf16, #tpu.memory_space<vmem>>, %arg3: memref<1x128xf32, #tpu.memory_space<vmem>>, %arg4: memref<128x128xbf16, #tpu.memory_space<vmem>>, %arg5: memref<1x128xf32, #tpu.memory_space<vmem>>, %arg6: memref<1x128xf32, #tpu.memory_space<vmem>>, %arg7: memref<1x128xf32, #tpu.memory_space<vmem>>, %arg8: memref<128x128xf32, #tpu.memory_space<vmem>>) attributes {dimension_semantics = [#tpu.dimension_semantics<parallel>], iteration_bounds = array<i64: 2>, scalar_prefetch = 0 : i64, scratch_operands = 0 : i64, tpu.core_type = #tpu.core_type<tc>, window_params = [{transform_indices = @transform_0, window_bounds = array<i64: 128, 32>}, {pipeline_mode = #tpu.pipeline_mode<synchronous>, transform_indices = @transform_1, window_bounds = array<i64: 32, 128>}, {pipeline_mode = #tpu.pipeline_mode<synchronous>, transform_indices = @transform_2, window_bounds = array<i64: 1, 128>}, {pipeline_mode = #tpu.pipeline_mode<synchronous>, transform_indices = @transform_3, window_bounds = array<i64: 128, 128>}, {pipeline_mode = #tpu.pipeline_mode<synchronous>, transform_indices = @transform_4, window_bounds = array<i64: 1, 128>}, {pipeline_mode = #tpu.pipeline_mode<synchronous>, transform_indices = @transform_5, window_bounds = array<i64: 1, 128>}, {pipeline_mode = #tpu.pipeline_mode<synchronous>, transform_indices = @transform_6, window_bounds = array<i64: 1, 128>}, {transform_indices = @transform_7, window_bounds = array<i64: 128, 128>}]} {
    %c0 = arith.constant 0 : index
    %c0_0 = arith.constant 0 : index
    %0 = vector.load %arg1[%c0, %c0_0] : memref<128x32xf32, #tpu.memory_space<vmem>>, vector<128x32xf32>
    %1 = arith.truncf %0 : vector<128x32xf32> to vector<128x32xbf16>
    %c0_1 = arith.constant 0 : index
    %c0_2 = arith.constant 0 : index
    %2 = vector.load %arg2[%c0_1, %c0_2] : memref<32x128xbf16, #tpu.memory_space<vmem>>, vector<32x128xbf16>
    %cst = arith.constant dense<0.000000e+00> : vector<128x128xf32>
    %3 = tpu.matmul %1, %2, %cst {dimension_numbers = #tpu.dot_dimension_numbers<[1], [0], [0], [1], [0, 0, 1, 1], [], []>} : vector<128x32xbf16>, vector<32x128xbf16>, vector<128x128xf32> -> vector<128x128xf32>
    %c0_3 = arith.constant 0 : index
    %c0_4 = arith.constant 0 : index
    %4 = vector.load %arg3[%c0_3, %c0_4] : memref<1x128xf32, #tpu.memory_space<vmem>>, vector<1x128xf32>
    %5 = vector.broadcast %4 : vector<1x128xf32> to vector<128x128xf32>
    %6 = arith.addf %3, %5 : vector<128x128xf32>
    %cst_5 = arith.constant 5.000000e-01 : f32
    %7 = vector.broadcast %cst_5 : f32 to vector<128x128xf32>
    %8 = arith.mulf %7, %6 : vector<128x128xf32>
    %cst_6 = arith.constant 0.707106769 : f32
    %9 = vector.broadcast %cst_6 : f32 to vector<128x128xf32>
    %10 = arith.mulf %6, %9 : vector<128x128xf32>
    %11 = math.erf %10 : vector<128x128xf32>
    %cst_7 = arith.constant 1.000000e+00 : f32
    %12 = vector.broadcast %cst_7 : f32 to vector<128x128xf32>
    %13 = arith.addf %12, %11 : vector<128x128xf32>
    %14 = arith.mulf %8, %13 : vector<128x128xf32>
    %15 = arith.truncf %14 : vector<128x128xf32> to vector<128x128xbf16>
    %c0_8 = arith.constant 0 : index
    %c0_9 = arith.constant 0 : index
    %16 = vector.load %arg4[%c0_8, %c0_9] : memref<128x128xbf16, #tpu.memory_space<vmem>>, vector<128x128xbf16>
    %cst_10 = arith.constant dense<0.000000e+00> : vector<128x128xf32>
    %17 = tpu.matmul %15, %16, %cst_10 {dimension_numbers = #tpu.dot_dimension_numbers<[1], [0], [0], [1], [0, 0, 1, 1], [], []>} : vector<128x128xbf16>, vector<128x128xbf16>, vector<128x128xf32> -> vector<128x128xf32>
    %c0_11 = arith.constant 0 : index
    %c0_12 = arith.constant 0 : index
    %18 = vector.load %arg5[%c0_11, %c0_12] : memref<1x128xf32, #tpu.memory_space<vmem>>, vector<1x128xf32>
    %19 = vector.broadcast %18 : vector<1x128xf32> to vector<128x128xf32>
    %20 = arith.addf %17, %19 : vector<128x128xf32>
    %21 = arith.addf %20, %6 : vector<128x128xf32>
    %cst_13 = arith.constant dense<0.000000e+00> : vector<128xf32>
    %22 = vector.multi_reduction <add>, %21, %cst_13 [1] : vector<128x128xf32> to vector<128xf32>
    %23 = vector.shape_cast %22 : vector<128xf32> to vector<128x1xf32>
    %cst_14 = arith.constant 1.562500e-02 : f32
    %24 = vector.broadcast %cst_14 : f32 to vector<128x1xf32>
    %25 = arith.mulf %23, %24 : vector<128x1xf32>
    %26 = arith.mulf %21, %21 : vector<128x128xf32>
    %cst_15 = arith.constant dense<0.000000e+00> : vector<128xf32>
    %27 = vector.multi_reduction <add>, %26, %cst_15 [1] : vector<128x128xf32> to vector<128xf32>
    %28 = vector.shape_cast %27 : vector<128xf32> to vector<128x1xf32>
    %cst_16 = arith.constant 1.562500e-02 : f32
    %29 = vector.broadcast %cst_16 : f32 to vector<128x1xf32>
    %30 = arith.mulf %28, %29 : vector<128x1xf32>
    %31 = arith.mulf %25, %25 : vector<128x1xf32>
    %32 = arith.subf %30, %31 : vector<128x1xf32>
    %cst_17 = arith.constant 0.000000e+00 : f32
    %33 = vector.broadcast %cst_17 : f32 to vector<128x1xf32>
    %34 = arith.maximumf %32, %33 : vector<128x1xf32>
    %35 = vector.broadcast %25 : vector<128x1xf32> to vector<128x128xf32>
    %36 = arith.subf %21, %35 : vector<128x128xf32>
    %cst_18 = arith.constant 9.99999974E-6 : f32
    %37 = vector.broadcast %cst_18 : f32 to vector<128x1xf32>
    %38 = arith.addf %34, %37 : vector<128x1xf32>
    %39 = math.rsqrt %38 : vector<128x1xf32>
    %40 = vector.broadcast %39 : vector<128x1xf32> to vector<128x128xf32>
    %41 = arith.mulf %36, %40 : vector<128x128xf32>
    %c0_19 = arith.constant 0 : index
    %c0_20 = arith.constant 0 : index
    %42 = vector.load %arg6[%c0_19, %c0_20] : memref<1x128xf32, #tpu.memory_space<vmem>>, vector<1x128xf32>
    %43 = vector.broadcast %42 : vector<1x128xf32> to vector<128x128xf32>
    %44 = arith.mulf %41, %43 : vector<128x128xf32>
    %c0_21 = arith.constant 0 : index
    %c0_22 = arith.constant 0 : index
    %45 = vector.load %arg7[%c0_21, %c0_22] : memref<1x128xf32, #tpu.memory_space<vmem>>, vector<1x128xf32>
    %46 = vector.broadcast %45 : vector<1x128xf32> to vector<128x128xf32>
    %47 = arith.addf %44, %46 : vector<128x128xf32>
    %c0_23 = arith.constant 0 : index
    %c0_24 = arith.constant 0 : index
    %48 = vector.load %arg8[%c0_23, %c0_24] : memref<128x128xf32, #tpu.memory_space<vmem>>, vector<128x128xf32>
    tpu.vector_store %arg8[%c0_23, %c0_24], %47 {strides = array<i32>} : memref<128x128xf32, #tpu.memory_space<vmem>>, vector<128x128xf32>,
    return
  }
  func.func @transform_0(%arg0: i32) -> (i32, i32) {
    %c0_i32 = arith.constant 0 : i32
    %c0_i32_0 = arith.constant 0 : i32
    return %arg0, %c0_i32 : i32, i32
  }
  func.func @transform_1(%arg0: i32) -> (i32, i32) {
    %c0_i32 = arith.constant 0 : i32
    %c0_i32_0 = arith.constant 0 : i32
    %c0_i32_1 = arith.constant 0 : i32
    return %c0_i32, %c0_i32_0 : i32, i32
  }
  func.func @transform_2(%arg0: i32) -> (i32, i32) {
    %c0_i32 = arith.constant 0 : i32
    %c0_i32_0 = arith.constant 0 : i32
    %c0_i32_1 = arith.constant 0 : i32
    return %c0_i32, %c0_i32_0 : i32, i32
  }
  func.func @transform_3(%arg0: i32) -> (i32, i32) {
    %c0_i32 = arith.constant 0 : i32
    %c0_i32_0 = arith.constant 0 : i32
    %c0_i32_1 = arith.constant 0 : i32
    return %c0_i32, %c0_i32_0 : i32, i32
  }
  func.func @transform_4(%arg0: i32) -> (i32, i32) {
    %c0_i32 = arith.constant 0 : i32
    %c0_i32_0 = arith.constant 0 : i32
    %c0_i32_1 = arith.constant 0 : i32
    return %c0_i32, %c0_i32_0 : i32, i32
  }
  func.func @transform_5(%arg0: i32) -> (i32, i32) {
    %c0_i32 = arith.constant 0 : i32
    %c0_i32_0 = arith.constant 0 : i32
    %c0_i32_1 = arith.constant 0 : i32
    return %c0_i32, %c0_i32_0 : i32, i32
  }
  func.func @transform_6(%arg0: i32) -> (i32, i32) {
    %c0_i32 = arith.constant 0 : i32
    %c0_i32_0 = arith.constant 0 : i32
    %c0_i32_1 = arith.constant 0 : i32
    return %c0_i32, %c0_i32_0 : i32, i32
  }
  func.func @transform_7(%arg0: i32) -> (i32, i32) {
    %c0_i32 = arith.constant 0 : i32
    %c0_i32_0 = arith.constant 0 : i32
    return %arg0, %c0_i32 : i32, i32
  }
}

module attributes {stable_mosaic.version = 11 : i64} {
  func.func @projection_head_kernel(%arg0: i32, %arg1: memref<128x32xf32, #tpu.memory_space<vmem>>, %arg2: memref<32x128xbf16, #tpu.memory_space<vmem>>, %arg3: memref<1x128xf32, #tpu.memory_space<vmem>>, %arg4: memref<128x128xbf16, #tpu.memory_space<vmem>>, %arg5: memref<1x128xf32, #tpu.memory_space<vmem>>, %arg6: memref<1x128xf32, #tpu.memory_space<vmem>>, %arg7: memref<1x128xf32, #tpu.memory_space<vmem>>, %arg8: memref<128x128xf32, #tpu.memory_space<vmem>>) attributes {dimension_semantics = [#tpu.dimension_semantics<parallel>], iteration_bounds = array<i64: 2>, scalar_prefetch = 0 : i64, scratch_operands = 0 : i64, tpu.core_type = #tpu.core_type<tc>, window_params = [{transform_indices = @transform_0, window_bounds = array<i64: 128, 32>}, {pipeline_mode = #tpu.pipeline_mode<synchronous>, transform_indices = @transform_1, window_bounds = array<i64: 32, 128>}, {pipeline_mode = #tpu.pipeline_mode<synchronous>, transform_indices = @transform_2, window_bounds = array<i64: 1, 128>}, {pipeline_mode = #tpu.pipeline_mode<synchronous>, transform_indices = @transform_3, window_bounds = array<i64: 128, 128>}, {pipeline_mode = #tpu.pipeline_mode<synchronous>, transform_indices = @transform_4, window_bounds = array<i64: 1, 128>}, {pipeline_mode = #tpu.pipeline_mode<synchronous>, transform_indices = @transform_5, window_bounds = array<i64: 1, 128>}, {pipeline_mode = #tpu.pipeline_mode<synchronous>, transform_indices = @transform_6, window_bounds = array<i64: 1, 128>}, {transform_indices = @transform_7, window_bounds = array<i64: 128, 128>}]} {
    %c0 = arith.constant 0 : index
    %c0_0 = arith.constant 0 : index
    %0 = vector.load %arg1[%c0, %c0_0] : memref<128x32xf32, #tpu.memory_space<vmem>>, vector<128x32xf32>
    %1 = arith.truncf %0 : vector<128x32xf32> to vector<128x32xbf16>
    %c0_1 = arith.constant 0 : index
    %c0_2 = arith.constant 0 : index
    %2 = vector.load %arg2[%c0_1, %c0_2] : memref<32x128xbf16, #tpu.memory_space<vmem>>, vector<32x128xbf16>
    %cst = arith.constant dense<0.000000e+00> : vector<128x128xf32>
    %3 = tpu.matmul %1, %2, %cst {dimension_numbers = #tpu.dot_dimension_numbers<[1], [0], [0], [1], [0, 0, 1, 1], [], []>} : vector<128x32xbf16>, vector<32x128xbf16>, vector<128x128xf32> -> vector<128x128xf32>
    %c0_3 = arith.constant 0 : index
    %c0_4 = arith.constant 0 : index
    %4 = vector.load %arg3[%c0_3, %c0_4] : memref<1x128xf32, #tpu.memory_space<vmem>>, vector<1x128xf32>
    %5 = vector.broadcast %4 : vector<1x128xf32> to vector<128x128xf32>
    %6 = arith.addf %3, %5 : vector<128x128xf32>
    %cst_5 = arith.constant 5.000000e-01 : f32
    %7 = vector.broadcast %cst_5 : f32 to vector<128x128xf32>
    %8 = arith.mulf %7, %6 : vector<128x128xf32>
    %cst_6 = arith.constant 0.707106769 : f32
    %9 = vector.broadcast %cst_6 : f32 to vector<128x128xf32>
    %10 = arith.mulf %6, %9 : vector<128x128xf32>
    %11 = math.erf %10 : vector<128x128xf32>
    %cst_7 = arith.constant 1.000000e+00 : f32
    %12 = vector.broadcast %cst_7 : f32 to vector<128x128xf32>
    %13 = arith.addf %12, %11 : vector<128x128xf32>
    %14 = arith.mulf %8, %13 : vector<128x128xf32>
    %15 = arith.truncf %14 : vector<128x128xf32> to vector<128x128xbf16>
    %c0_8 = arith.constant 0 : index
    %c0_9 = arith.constant 0 : index
    %16 = vector.load %arg4[%c0_8, %c0_9] : memref<128x128xbf16, #tpu.memory_space<vmem>>, vector<128x128xbf16>
    %cst_10 = arith.constant dense<0.000000e+00> : vector<128x128xf32>
    %17 = tpu.matmul %15, %16, %cst_10 {dimension_numbers = #tpu.dot_dimension_numbers<[1], [0], [0], [1], [0, 0, 1, 1], [], []>} : vector<128x128xbf16>, vector<128x128xbf16>, vector<128x128xf32> -> vector<128x128xf32>
    %c0_11 = arith.constant 0 : index
    %c0_12 = arith.constant 0 : index
    %18 = vector.load %arg5[%c0_11, %c0_12] : memref<1x128xf32, #tpu.memory_space<vmem>>, vector<1x128xf32>
    %19 = vector.broadcast %18 : vector<1x128xf32> to vector<128x128xf32>
    %20 = arith.addf %17, %19 : vector<128x128xf32>
    %21 = arith.addf %20, %6 : vector<128x128xf32>
    %cst_13 = arith.constant dense<0.000000e+00> : vector<128xf32>
    %22 = vector.multi_reduction <add>, %21, %cst_13 [1] : vector<128x128xf32> to vector<128xf32>
    %23 = vector.shape_cast %22 : vector<128xf32> to vector<128x1xf32>
    %cst_14 = arith.constant 1.562500e-02 : f32
    %24 = vector.broadcast %cst_14 : f32 to vector<128x1xf32>
    %25 = arith.mulf %23, %24 : vector<128x1xf32>
    %26 = arith.mulf %21, %21 : vector<128x128xf32>
    %cst_15 = arith.constant dense<0.000000e+00> : vector<128xf32>
    %27 = vector.multi_reduction <add>, %26, %cst_15 [1] : vector<128x128xf32> to vector<128xf32>
    %28 = vector.shape_cast %27 : vector<128xf32> to vector<128x1xf32>
    %cst_16 = arith.constant 1.562500e-02 : f32
    %29 = vector.broadcast %cst_16 : f32 to vector<128x1xf32>
    %30 = arith.mulf %28, %29 : vector<128x1xf32>
    %31 = arith.mulf %25, %25 : vector<128x1xf32>
    %32 = arith.subf %30, %31 : vector<128x1xf32>
    %cst_17 = arith.constant 0.000000e+00 : f32
    %33 = vector.broadcast %cst_17 : f32 to vector<128x1xf32>
    %34 = arith.maximumf %32, %33 : vector<128x1xf32>
    %35 = vector.broadcast %25 : vector<128x1xf32> to vector<128x128xf32>
    %36 = arith.subf %21, %35 : vector<128x128xf32>
    %cst_18 = arith.constant 9.99999974E-6 : f32
    %37 = vector.broadcast %cst_18 : f32 to vector<128x1xf32>
    %38 = arith.addf %34, %37 : vector<128x1xf32>
    %39 = math.rsqrt %38 : vector<128x1xf32>
    %40 = vector.broadcast %39 : vector<128x1xf32> to vector<128x128xf32>
    %41 = arith.mulf %36, %40 : vector<128x128xf32>
    %c0_19 = arith.constant 0 : index
    %c0_20 = arith.constant 0 : index
    %42 = vector.load %arg6[%c0_19, %c0_20] : memref<1x128xf32, #tpu.memory_space<vmem>>, vector<1x128xf32>
    %43 = vector.broadcast %42 : vector<1x128xf32> to vector<128x128xf32>
    %44 = arith.mulf %41, %43 : vector<128x128xf32>
    %c0_21 = arith.constant 0 : index
    %c0_22 = arith.constant 0 : index
    %45 = vector.load %arg7[%c0_21, %c0_22] : memref<1x128xf32, #tpu.memory_space<vmem>>, vector<1x128xf32>
    %46 = vector.broadcast %45 : vector<1x128xf32> to vector<128x128xf32>
    %47 = arith.addf %44, %46 : vector<128x128xf32>
    %c0_23 = arith.constant 0 : index
    %c0_24 = arith.constant 0 : index
    %48 = vector.load %arg8[%c0_23, %c0_24] : memref<128x128xf32, #tpu.memory_space<vmem>>, vector<128x128xf32>
    tpu.vector_store %arg8[%c0_23, %c0_24], %47 {strides = array<i32>} : memref<128x128xf32, #tpu.memory_space<vmem>>, vector<128x128xf32>,
    return
  }
  func.func @transform_0(%arg0: i32) -> (i32, i32) {
    %c0_i32 = arith.constant 0 : i32
    %c0_i32_0 = arith.constant 0 : i32
    return %arg0, %c0_i32 : i32, i32
  }
  func.func @transform_1(%arg0: i32) -> (i32, i32) {
    %c0_i32 = arith.constant 0 : i32
    %c0_i32_0 = arith.constant 0 : i32
    %c0_i32_1 = arith.constant 0 : i32
    return %c0_i32, %c0_i32_0 : i32, i32
  }
  func.func @transform_2(%arg0: i32) -> (i32, i32) {
    %c0_i32 = arith.constant 0 : i32
    %c0_i32_0 = arith.constant 0 : i32
    %c0_i32_1 = arith.constant 0 : i32
    return %c0_i32, %c0_i32_0 : i32, i32
  }
  func.func @transform_3(%arg0: i32) -> (i32, i32) {
    %c0_i32 = arith.constant 0 : i32
    %c0_i32_0 = arith.constant 0 : i32
    %c0_i32_1 = arith.constant 0 : i32
    return %c0_i32, %c0_i32_0 : i32, i32
  }
  func.func @transform_4(%arg0: i32) -> (i32, i32) {
    %c0_i32 = arith.constant 0 : i32
    %c0_i32_0 = arith.constant 0 : i32
    %c0_i32_1 = arith.constant 0 : i32
    return %c0_i32, %c0_i32_0 : i32, i32
  }
  func.func @transform_5(%arg0: i32) -> (i32, i32) {
    %c0_i32 = arith.constant 0 : i32
    %c0_i32_0 = arith.constant 0 : i32
    %c0_i32_1 = arith.constant 0 : i32
    return %c0_i32, %c0_i32_0 : i32, i32
  }
  func.func @transform_6(%arg0: i32) -> (i32, i32) {
    %c0_i32 = arith.constant 0 : i32
    %c0_i32_0 = arith.constant 0 : i32
    %c0_i32_1 = arith.constant 0 : i32
    return %c0_i32, %c0_i32_0 : i32, i32
  }
  func.func @transform_7(%arg0: i32) -> (i32, i32) {
    %c0_i32 = arith.constant 0 : i32
    %c0_i32_0 = arith.constant 0 : i32
    return %arg0, %c0_i32 : i32, i32
  }
}

</mosaic_0001>

<bundles_post_ra>
// kernel: tpu_custom_call.1
= control target key start
LH: loop header
LB: loop body
LE: loop exit
PB: predicated region body
PF: predicated region fallthrough
CT: control target
= control target key end

     0   :  { %12 = vsyncpa [#allocation3], 0  ;;  %s1936_s0 = inlined_call_operand.vmem [shape: f32[256,32], index: 0, kind: input, shape index: {}]   ;;  %s1937_s1 = inlined_call_operand.vmem [shape: bf16[32,128], index: 1, kind: input, shape index: {}]   ;;  %s1938_s2 = inlined_call_operand.vmem [shape: f32[1,128], index: 2, kind: input, shape index: {}]   ;;  %s1939_s3 = inlined_call_operand.vmem [shape: bf16[128,128], index: 3, kind: input, shape index: {}]   ;;  %s1940_s4 = inlined_call_operand.vmem [shape: f32[1,128], index: 4, kind: input, shape index: {}]   ;;  %s1941_s5 = inlined_call_operand.vmem [shape: f32[1,128], index: 5, kind: input, shape index: {}]   ;;  %s1942_s6 = inlined_call_operand.vmem [shape: f32[1,128], index: 6, kind: input, shape index: {}]   ;;  %s1943_s7 = inlined_call_operand.hbm [shape: f32[256,128], index: 7, kind: output, shape index: {}]  }
   0x1   :  { %14 = vsyncpa [#allocation3 + $0x1], 0  ;;  %s1435_s24 = smov 0   ;;  %s1437_s25 = smov 0  }
   0x2   :  { %s1439_s26 = smov 0   ;;  %s1441_s27 = smov 0  }
   0x3 LB: > { %s1456_s28 = sadd.s32 4294967295, %s1390_s27   ;;  %s1084_s29 = sadd.s32 4294967294, %s1390_s27   ;;  %s1390_s27 = sphi %s1441_s27, %s1949_s27   ;;  %s1386_s26 = sphi %s1439_s26, %s1948_s26   ;;  %s1382_s25 = sphi %s1437_s25, %s1947_s25   ;;  %s1378_s24 = sphi %s1435_s24, %s1946_s24  }
   0x4   : > { %s1460_s30 = sadd.s32 1, %s1390_s27   ;;  %s179_s8 = sadd.s32 1, %s1386_s26 }
   0x5   : > { %s176_s9 = ssub.s32 %s1390_s27, %s1460_s30  ;;  %p189_p0 = scmp.ne.s32.totalorder %s1386_s26, %s1382_s25 }
   0x6   : > { %p177_p1 = scmp.eq.s32.totalorder %s176_s9, 0  ;;  %p190_p2 = scmp.eq.s32.totalorder %s1456_s28, 1 }
   0x7   : > { %p195_p3 = scmp.ne.s32.totalorder %s1382_s25, %s1378_s24  ;;  %p196_p4 = scmp.eq.s32.totalorder %s1084_s29, 1 }
   0x8   : > { %s1471_s10 = scalar_select %p177_p1, %s1386_s26, %s179_s8  }
   0x9   : > { %p1473_p5 = por %p190_p2, %p189_p0  ;;  %p1477_p6 = por %p196_p4, %p195_p3 }
   0xa   : > { %p1087_p7 = scmp.ge.s32.totalorder %s1390_s27, 1  ;;  %p241_p8 = scmp.lt.s32.totalorder %s1390_s27, 3 }
   0xc   : > { %p242_p9 = pnand %p1087_p7, %p241_p8 }
   0xd   : > { %v1254_v0 = vld [vmem:[%s1937_s1] sm:$0xff] (!%p242_p9)   ;;  %s1089_s15 = sshll.u32 (!%p242_p9), %s1456_s28, 4  ;;  %v1255_v1 = vld [vmem:[%s1937_s1 + $0x8] sm:$0xff] (!%p242_p9)   ;;  %vm328_vm0 = vcmask (!%p242_p9), 261120   ;;  %v1258_v28 = vld [vmem:[%s1939_s3 + $0x10] sm:$0xff] (!%p242_p9)   ;;  %s270_s14 = sand.u32 (!%p242_p9), 1, %s1382_s25  }
   0xe   : > { %245 = sbr.rel (%p242_p9) target bundleno = 724 (0x2d4), region = 48  ;;  %p274_p10 = scmp.lt.s32.totalorder (!%p242_p9), %s1089_s15, 31  ;;  %1145 = vmatprep.subr.bf16.mxu0 (!%p242_p9), %v1254_v0  ;;  %v1256_v2 = vld [vmem:[%s1939_s3] sm:$0xff] (!%p242_p9)   ;;  %v1257_v3 = vld [vmem:[%s1939_s3 + $0x8] sm:$0xff] (!%p242_p9)   ;;  %v1259_v29 = vld [vmem:[%s1939_s3 + $0x18] sm:$0xff] (!%p242_p9)  }
   0xf   : > { %1146 = vmatpush3.bf16.msra.mxu0 (!%p242_p9), %v1254_v0  ;;  %1197 = vmatprep.subr.bf16.mxu1 (!%p242_p9), %v1256_v2  ;;  %v1260_v30 = vld [vmem:[%s1939_s3 + $0x20] sm:$0xff] (!%p242_p9)   ;;  %v1261_v31 = vld [vmem:[%s1939_s3 + $0x28] sm:$0xff] (!%p242_p9)   ;;  %v1262_v32 = vld [vmem:[%s1939_s3 + $0x30] sm:$0xff] (!%p242_p9)   ;;  %s1088_s17 = sshll.u32 (!%p242_p9), %s270_s14, 7  ;;  %s1118_s21 = sshll.u32 (!%p242_p9), %s1456_s28, 11 }
  0x10   : > { %1147 = vmatprep.subr.bf16.mxu0 (!%p242_p9), %v1255_v1  ;;  %1205 = vmatpush3.bf16.msra.mxu1 (!%p242_p9), %v1256_v2  ;;  %v1263_v33 = vld [vmem:[%s1939_s3 + $0x38] sm:$0xff] (!%p242_p9)   ;;  %v1546_v34 = vld [vmem:[%s1938_s2] ss:$0 sm:$0xff] (!%p242_p9)  ;;  %s1791_s20 = scalar_lea.vmem (!%p242_p9), [#allocation2], %s1088_s17  ;;  %s1895_s28 = scalar_lea.sflag (!%p242_p9), [#allocation3], %s270_s14 }
  0x11   : > { %1198 = vmatprep.subr.bf16.mxu1 (!%p242_p9), %v1257_v3  ;;  %s1392_s13 = smov (!%p242_p9), [#allocation2]  }
  0x13   : > { %1148 = vmatpush3.bf16.msra.mxu0 (!%p242_p9), %v1255_v1 }
  0x14   : > { %1165 = vmatprep.subr.bf16.mxu0 (!%p242_p9), %v1256_v2  ;;  %1206 = vmatpush3.bf16.msra.mxu1 (!%p242_p9), %v1257_v3 }
  0x15   : > { %s1951_s15 = smov (!%p274_p10, %s1089_s15), 31  ;;  %1199 = vmatprep.subr.bf16.mxu1 %v1258_v28 }
  0x16   : > { %s1090_s22 = sshll.u32 %s1951_s15, 3  ;;  %s1332_s15 = sshll.u32 %s1392_s13, 4  ;;  %s1333_s15 = int_to_ptr.vmem [resolvable:$false] %s1332_s15 }
  0x17   : > { %s1499_s8 = scalar_lea.vmem %s1936_s0, %s1090_s22  ;;  %s1022_s22 = sshll.u32 %s1791_s20, 4  ;;  %s1888_s22 = int_to_ptr.vmem [resolvable:$true] %s1022_s22 }
  0x18   : > { %v281_v4 = vld [vmem:[%s1499_s8] sm:$0xff]  ;;  %v282_v5 = vld [vmem:[%s1499_s8 + $0x8] sm:$0xff]  ;;  %v283_v6 = vld [vmem:[%s1499_s8 + $0x10] sm:$0xff]  ;;  %1207 = vmatpush3.bf16.msra.mxu1 %v1258_v28  ;;  %s1328_s9 = scalar_lea.vmem %s1888_s22, 2048  ;;  %s1334_s16 = scalar_lea.vmem %s1333_s15, 4096 }
  0x19   : > { %v297_v7 = vpack.c.bf16 %v282_v5, %v281_v4  ;;  %v284_v8 = vld [vmem:[%s1499_s8 + $0x18] sm:$0xff]  ;;  %v285_v9 = vld [vmem:[%s1499_s8 + $0x20] sm:$0xff]  ;;  %v286_v10 = vld [vmem:[%s1499_s8 + $0x28] sm:$0xff]  ;;  %1200 = vmatprep.subr.bf16.mxu1 %v1259_v29  ;;  %p1329_p11 = scmp.ne.s32.totalorder %s1888_s22, %s1328_s9  ;;  %p1335_p0 = scmp.lt.s32.totalorder %s1888_s22, %s1333_s15 }
  0x1a   : > { %v298_v11 = vpack.c.bf16 %v284_v8, %v283_v6  ;;  %v299_v12 = vpack.c.bf16 %v286_v10, %v285_v9  ;;  %v287_v13 = vld [vmem:[%s1499_s8 + $0x30] sm:$0xff]  ;;  %v288_v14 = vld [vmem:[%s1499_s8 + $0x38] sm:$0xff]  ;;  %v289_v15 = vld [vmem:[%s1499_s8 + $0x40] sm:$0xff]  ;;  %p1336_p1 = scmp.lt.s32.totalorder %s1334_s16, %s1328_s9 }
  0x1b   : > { %1149 = vmatprep.mubr.msk.bf16.mxu0 %vm328_vm0, %v297_v7  ;;  %v290_v16 = vld [vmem:[%s1499_s8 + $0x48] sm:$0xff]  ;;  %v300_v17 = vpack.c.bf16 %v288_v14, %v287_v13  ;;  %v291_v19 = vld [vmem:[%s1499_s8 + $0x50] sm:$0xff]  ;;  %v292_v20 = vld [vmem:[%s1499_s8 + $0x58] sm:$0xff]  ;;  %p1330_p12 = pnand %p1329_p11, %p1473_p5 }
  0x1c   : > { %1150 = vmatmul.mubr.msk.bf16.vlgmr.msra.gmra.mrb[0].mxu0 %vm328_vm0, %v298_v11  ;;  %v301_v18 = vpack.c.bf16 %v290_v16, %v289_v15  ;;  %v293_v21 = vld [vmem:[%s1499_s8 + $0x60] sm:$0xff]  ;;  %v294_v22 = vld [vmem:[%s1499_s8 + $0x68] sm:$0xff]  ;;  %v302_v23 = vpack.c.bf16 %v292_v20, %v291_v19  ;;  %v295_v25 = vld [vmem:[%s1499_s8 + $0x70] sm:$0xff]  ;;  %1208 = vmatpush3.bf16.msra.mxu1 %v1259_v29  ;;  %p1337_p2 = por %p1336_p1, %p1335_p0 }
  0x1d   : > { %1153 = vmatprep.mubr.msk.bf16.mxu0 %vm328_vm0, %v299_v12  ;;  %1166 = vmatpush3.bf16.msra.mxu0 %v1256_v2  ;;  %v303_v24 = vpack.c.bf16 %v294_v22, %v293_v21  ;;  %v296_v26 = vld [vmem:[%s1499_s8 + $0x78] sm:$0xff]  ;;  %s1886_s8 = scalar_lea.hbm %s1943_s7, %s1118_s21  ;;  %p1331_p13 = pneg %p1330_p12 }
  0x1e   : > { %1167 = vmatprep.subr.bf16.mxu0 %v1257_v3  ;;  %v304_v27 = vpack.c.bf16 %v296_v26, %v295_v25  ;;  %1201 = vmatprep.subr.bf16.mxu1 %v1260_v30 }
  0x1f   : > { %p1338_p3 = pnand %p1337_p2, %p1331_p13 }
  0x20   : > { %1209 = vmatpush3.bf16.msra.mxu1 %v1260_v30 }
  0x21   : > { %1168 = vmatpush3.bf16.msra.mxu0 %v1257_v3  ;;  %1202 = vmatprep.subr.bf16.mxu1 %v1261_v31 }
  0x22   : > { %1169 = vmatprep.subr.bf16.mxu0 %v1258_v28 }
  0x24   : > { %1154 = vmatmul.mubr.msk.bf16.gmra.mrb[4].mxu0 %vm328_vm0, %v300_v17  ;;  %1210 = vmatpush3.bf16.msra.mxu1 %v1261_v31 }
  0x25   : > { %1157 = vmatprep.mubr.msk.bf16.mxu0 %vm328_vm0, %v301_v18  ;;  %1170 = vmatpush3.bf16.msra.mxu0 %v1258_v28 }
  0x26   : > { %1171 = vmatprep.subr.bf16.mxu0 %v1259_v29  ;;  %1203 = vmatprep.subr.bf16.mxu1 %v1262_v32 }
  0x28   : > { %1211 = vmatpush3.bf16.msra.mxu1 %v1262_v32 }
  0x29   : > { %1172 = vmatpush3.bf16.msra.mxu0 %v1259_v29  ;;  %1204 = vmatprep.subr.bf16.mxu1 %v1263_v33 }
  0x2a   : > { %1173 = vmatprep.subr.bf16.mxu0 %v1260_v30 }
  0x2c   : > { %1158 = vmatmul.mubr.msk.bf16.gmra.mrb[8].mxu0 %vm328_vm0, %v302_v23  ;;  %1212 = vmatpush3.bf16.msra.mxu1 %v1263_v33 }
  0x2d   : > { %1161 = vmatprep.mubr.msk.bf16.mxu0 %vm328_vm0, %v303_v24  ;;  %1174 = vmatpush3.bf16.msra.mxu0 %v1260_v30 }
  0x2e   : > { %1175 = vmatprep.subr.bf16.mxu0 %v1261_v31 }
  0x31   : > { %1176 = vmatpush3.bf16.msra.mxu0 %v1261_v31 }
  0x32   : > { %1177 = vmatprep.subr.bf16.mxu0 %v1262_v32 }
  0x34   : > { %1162 = vmatmul.mubr.msk.bf16.gmra.mrb[12].mxu0 %vm328_vm0, %v304_v27 }
  0x35   : > { %1178 = vmatpush3.bf16.msra.mxu0 %v1262_v32 }
  0x36   : > { %1179 = vmatprep.subr.bf16.mxu0 %v1263_v33 }
  0x39   : > { %1180 = vmatpush3.bf16.msra.mxu0 %v1263_v33 }
  0xef   : > { %v1151_v35 = vpop.f32.mrb[0].mxu0 }
  0xf0   : > { %v1549_v36 = vadd.f32 %v1151_v35, %v1546_v34  ;;  %v387_v37 = vpop.f32.mrb[1].mxu0 }
  0xf1   : > { %v1552_v38 = vadd.f32 %v1546_v34, %v387_v37  ;;  %v1152_v39 = vpop.f32.mrb[2].mxu0 }
  0xf2   : > { %v468_v40 = vmul.f32 0.70710677, %v1549_v36  ;;  %v1556_v41 = vadd.f32 %v1152_v39, %v1546_v34  ;;  %v390_v42 = vpop.f32.mrb[3].mxu0  ;;  %v452_v17 = vmul.f32 0.5, %v1549_v36 }
  0xf3   : > { %v466_v43 = vmul.f32 0.70710677, %v1552_v38  ;;  %v1560_v44 = vadd.f32 %v1546_v34, %v390_v42  ;;  %v450_v14 = vmul.f32 0.5, %v1552_v38 }
  0xf4   : > { %1264 = verf.f32 %v468_v40  ;;  %v469_v45 = vmul.f32 0.70710677, %v1556_v41  ;;  %v453_v11 = vmul.f32 0.5, %v1556_v41 }
  0xf5   : > { %1266 = verf.f32 %v466_v43  ;;  %v467_v46 = vmul.f32 0.70710677, %v1560_v44  ;;  %v451_v15 = vmul.f32 0.5, %v1560_v44 }
  0xf6   : > { %1268 = verf.f32 %v469_v45 }
  0xf7   : > { %1270 = verf.f32 %v467_v46  ;;  %v1155_v47 = vpop.f32.mrb[4].mxu0 }
  0xf8   : > { %v1565_v48 = vadd.f32 %v1155_v47, %v1546_v34  ;;  %v403_v49 = vpop.f32.mrb[5].mxu0 }
  0xf9   : > { %v1568_v50 = vadd.f32 %v1546_v34, %v403_v49  ;;  %v1156_v51 = vpop.f32.mrb[6].mxu0 }
  0xfa   : > { %v472_v52 = vmul.f32 0.70710677, %v1565_v48  ;;  %v1572_v53 = vadd.f32 %v1156_v51, %v1546_v34  ;;  %v406_v54 = vpop.f32.mrb[7].mxu0  ;;  %v456_v49 = vmul.f32 0.5, %v1565_v48 }
  0xfb   : > { %v470_v55 = vmul.f32 0.70710677, %v1568_v50  ;;  %v1576_v56 = vadd.f32 %v1546_v34, %v406_v54  ;;  %v454_v30 = vmul.f32 0.5, %v1568_v50 }
  0xfc   : > { %1272 = verf.f32 %v472_v52  ;;  %v473_v57 = vmul.f32 0.70710677, %v1572_v53  ;;  %v457_v51 = vmul.f32 0.5, %v1572_v53 }
  0xfd   : > { %1274 = verf.f32 %v470_v55  ;;  %v471_v58 = vmul.f32 0.70710677, %v1576_v56  ;;  %v455_v46 = vmul.f32 0.5, %v1576_v56 }
  0xfe   : > { %v1265_v59 = vpop.eup %1264  ;;  %1276 = verf.f32 %v473_v57 }
  0xff   : > { %v1267_v60 = vpop.eup %1266  ;;  %1278 = verf.f32 %v471_v58  ;;  %v1159_v61 = vpop.f32.mrb[8].mxu0  ;;  %v500_v10 = vadd.f32 1.0, %v1265_v59 }
 0x100   : > { %v1269_v62 = vpop.eup %1268  ;;  %v1581_v63 = vadd.f32 %v1159_v61, %v1546_v34  ;;  %v419_v0 = vpop.f32.mrb[9].mxu0  ;;  %v498_v8 = vadd.f32 1.0, %v1267_v60 }
 0x101   : > { %v1271_v1 = vpop.eup %1270  ;;  %v501_v2 = vadd.f32 1.0, %v1269_v62  ;;  %v1584_v3 = vadd.f32 %v1546_v34, %v419_v0  ;;  %v1160_v4 = vpop.f32.mrb[10].mxu0  ;;  %v516_v24 = vmul.f32 %v500_v10, %v452_v17 }
 0x102   : > { %v476_v5 = vmul.f32 0.70710677, %v1581_v63  ;;  %v1588_v6 = vadd.f32 %v1160_v4, %v1546_v34  ;;  %v422_v7 = vpop.f32.mrb[11].mxu0  ;;  %v499_v9 = vadd.f32 1.0, %v1271_v1  ;;  %v514_v21 = vmul.f32 %v498_v8, %v450_v14 }
 0x103   : > { %v474_v12 = vmul.f32 0.70710677, %v1584_v3  ;;  %v1593_v13 = vadd.f32 %v1546_v34, %v422_v7  ;;  %v517_v18 = vmul.f32 %v501_v2, %v453_v11  ;;  %v460_v0 = vmul.f32 0.5, %v1581_v63 }
 0x104   : > { %1280 = verf.f32 %v476_v5  ;;  %v477_v16 = vmul.f32 0.70710677, %v1588_v6  ;;  %v515_v22 = vmul.f32 %v499_v9, %v451_v15  ;;  %v458_v1 = vmul.f32 0.5, %v1584_v3 }
 0x105   : > { %1282 = verf.f32 %v474_v12  ;;  %v475_v19 = vmul.f32 0.70710677, %v1593_v13  ;;  %v531_v33 = vpack.c.bf16 %v517_v18, %v516_v24  ;;  %v459_v9 = vmul.f32 0.5, %v1593_v13 }
 0x106   : > { %v1273_v20 = vpop.eup %1272  ;;  %1284 = verf.f32 %v477_v16  ;;  %v530_v29 = vpack.c.bf16 %v515_v22, %v514_v21 }
 0x107   : > { %v1275_v23 = vpop.eup %1274  ;;  %1286 = verf.f32 %v475_v19  ;;  %v1163_v25 = vpop.f32.mrb[12].mxu0  ;;  %v504_v39 = vadd.f32 1.0, %v1273_v20 }
 0x108   : > { %v1277_v26 = vpop.eup %1276  ;;  %v1601_v27 = vadd.f32 %v1163_v25, %v1546_v34  ;;  %v435_v28 = vpop.f32.mrb[13].mxu0  ;;  %v502_v31 = vadd.f32 1.0, %v1275_v23  ;;  %1181 = vmatprep.mubr.bf16.mxu0 %v530_v29 }
 0x109   : > { %v1279_v32 = vpop.eup %1278  ;;  %v1605_v35 = vadd.f32 %v1546_v34, %v435_v28  ;;  %v1164_v37 = vpop.f32.mrb[14].mxu0  ;;  %v505_v40 = vadd.f32 1.0, %v1277_v26  ;;  %1182 = vmatmul.mubr.bf16.vlgmr.msra.gmra.mrb[16].mxu0 %v531_v33  ;;  %v520_v60 = vmul.f32 %v504_v39, %v456_v49 }
 0x10a   : > { %v480_v42 = vmul.f32 0.70710677, %v1601_v27  ;;  %v1609_v43 = vadd.f32 %v1164_v37, %v1546_v34  ;;  %v438_v45 = vpop.f32.mrb[15].mxu0  ;;  %v503_v47 = vadd.f32 1.0, %v1279_v32  ;;  %v518_v57 = vmul.f32 %v502_v31, %v454_v30 }
 0x10b   : > { %v478_v52 = vmul.f32 0.70710677, %v1605_v35  ;;  %v1616_v54 = vadd.f32 %v1546_v34, %v438_v45  ;;  %v521_v61 = vmul.f32 %v505_v40, %v457_v51  ;;  %v461_v34 = vmul.f32 0.5, %v1588_v6 }
 0x10c   : > { %1288 = verf.f32 %v480_v42  ;;  %v481_v55 = vmul.f32 0.70710677, %v1609_v43  ;;  %v519_v58 = vmul.f32 %v503_v47, %v455_v46  ;;  %v464_v19 = vmul.f32 0.5, %v1601_v27  ;;  %v1631_v47 = vld [vmem:[%s1940_s4] ss:$0 sm:$0xff] }
 0x10d   : > { %1290 = verf.f32 %v478_v52  ;;  %v479_v59 = vmul.f32 0.70710677, %v1616_v54  ;;  %v533_v5 = vpack.c.bf16 %v521_v61, %v520_v60  ;;  %v462_v21 = vmul.f32 0.5, %v1605_v35 }
 0x10e   : > { %v1281_v62 = vpop.eup %1280  ;;  %1292 = verf.f32 %v481_v55  ;;  %v532_v2 = vpack.c.bf16 %v519_v58, %v518_v57  ;;  %v465_v24 = vmul.f32 0.5, %v1609_v43  ;;  %v463_v29 = vmul.f32 0.5, %v1616_v54 }
 0x10f   : > { %v1283_v4 = vpop.eup %1282  ;;  %1294 = verf.f32 %v479_v59  ;;  %v508_v7 = vadd.f32 1.0, %v1281_v62 }
 0x110   : > { %v1285_v8 = vpop.eup %1284  ;;  %1185 = vmatprep.mubr.bf16.mxu1 %v532_v2  ;;  %v506_v10 = vadd.f32 1.0, %v1283_v4 }
 0x111   : > { %v1287_v11 = vpop.eup %1286  ;;  %1186 = vmatmul.mubr.bf16.vlgmr.msra.gmra.mrb[0].mxu1 %v533_v5  ;;  %v509_v12 = vadd.f32 1.0, %v1285_v8  ;;  %v524_v16 = vmul.f32 %v508_v7, %v460_v0 }
 0x112   : > { %v507_v14 = vadd.f32 1.0, %v1287_v11  ;;  %v522_v15 = vmul.f32 %v506_v10, %v458_v1 }
 0x113   : > { %v525_v17 = vmul.f32 %v509_v12, %v461_v34 }
 0x114   : > { %v523_v18 = vmul.f32 %v507_v14, %v459_v9 }
 0x115   : > { %v535_v25 = vpack.c.bf16 %v525_v17, %v524_v16 }
 0x116   : > { %v1289_v20 = vpop.eup %1288  ;;  %v534_v22 = vpack.c.bf16 %v523_v18, %v522_v15 }
 0x117   : > { %v1291_v23 = vpop.eup %1290  ;;  %v512_v26 = vadd.f32 1.0, %v1289_v20 }
 0x118   : > { %v1293_v28 = vpop.eup %1292  ;;  %1189 = vmatprep.mubr.bf16.mxu1 %v534_v22  ;;  %v510_v30 = vadd.f32 1.0, %v1291_v23 }
 0x119   : > { %v1295_v31 = vpop.eup %1294  ;;  %1190 = vmatmul.mubr.bf16.gmra.mrb[4].mxu1 %v535_v25  ;;  %v513_v32 = vadd.f32 1.0, %v1293_v28  ;;  %v528_v33 = vmul.f32 %v512_v26, %v464_v19 }
 0x11a   : > { %v511_v37 = vadd.f32 1.0, %v1295_v31  ;;  %v526_v39 = vmul.f32 %v510_v30, %v462_v21 }
 0x11b   : > { %v529_v40 = vmul.f32 %v513_v32, %v465_v24 }
 0x11c   : > { %v527_v42 = vmul.f32 %v511_v37, %v463_v29 }
 0x11d   : > { %v537_v45 = vpack.c.bf16 %v529_v40, %v528_v33 }
 0x11e   : > { %v536_v46 = vpack.c.bf16 %v527_v42, %v526_v39 }
 0x120   : > { %1193 = vmatprep.mubr.bf16.mxu1 %v536_v46 }
 0x121   : > { %1194 = vmatmul.mubr.bf16.gmra.mrb[8].mxu1 %v537_v45 }
 0x1dc   : > { %v1183_v49 = vpop.f32.mrb[16].mxu0 }
 0x1dd   : > { %v652_v51 = vadd.f32 %v1183_v49, %v1631_v47  ;;  %v643_v52 = vpop.f32.mrb[17].mxu0 }
 0x1de   : > { %v644_v55 = vadd.f32 %v1631_v47, %v643_v52  ;;  %v1184_v57 = vpop.f32.mrb[18].mxu0 }
 0x1df   : > { %v1636_v58 = vadd.f32 %v652_v51, %v1549_v36  ;;  %v655_v59 = vadd.f32 %v1184_v57, %v1631_v47  ;;  %v646_v60 = vpop.f32.mrb[19].mxu0 }
 0x1e0   : > { %v1640_v61 = vadd.f32 %v644_v55, %v1552_v38  ;;  %v647_v1 = vadd.f32 %v1631_v47, %v646_v60 }
 0x1e1   : > { %726 = vadd.xlane.f32.xlu1 %v1636_v58  ;;  %v1645_v0 = vadd.f32 %v655_v59, %v1556_v41  ;;  %v772_v36 = vmul.f32 %v1636_v58, %v1636_v58 }
 0x1e2   : > { %722 = vadd.xlane.f32.xlu0 %v1640_v61  ;;  %v1652_v38 = vadd.f32 %v647_v1, %v1560_v44  ;;  %v770_v44 = vmul.f32 %v1640_v61, %v1640_v61 }
 0x1e3   : > { %v773_v5 = vmul.f32 %v1645_v0, %v1645_v0 }
 0x1e4   : > { %v1187_v62 = vpop.f32.mrb[0].mxu1  ;;  %v771_v9 = vmul.f32 %v1652_v38, %v1652_v38 }
 0x1e5   : > { %v659_v2 = vpop.f32.mrb[1].mxu1  ;;  %728 = vadd.xlane.f32.xlu1 %v1645_v0  ;;  %v668_v10 = vadd.f32 %v1187_v62, %v1631_v47 }
 0x1e6   : > { %v1188_v4 = vpop.f32.mrb[2].mxu1  ;;  %790 = vadd.xlane.f32.xlu0 %v772_v36  ;;  %v660_v17 = vadd.f32 %v1631_v47, %v659_v2 }
 0x1e7   : > { %v662_v34 = vpop.f32.mrb[3].mxu1  ;;  %v671_v7 = vadd.f32 %v1188_v4, %v1631_v47  ;;  %v1668_v16 = vadd.f32 %v668_v10, %v1565_v48 }
 0x1e8   : > { %v663_v15 = vadd.f32 %v1631_v47, %v662_v34  ;;  %v1677_v21 = vadd.f32 %v660_v17, %v1568_v50 }
 0x1e9   : > { %792 = vadd.xlane.f32.xlu1 %v773_v5  ;;  %v1664_v14 = vadd.f32 %v671_v7, %v1572_v53  ;;  %v776_v23 = vmul.f32 %v1668_v16, %v1668_v16 }
 0x1ea   : > { %724 = vadd.xlane.f32.xlu0 %v1652_v38  ;;  %v1674_v19 = vadd.f32 %v663_v15, %v1576_v56  ;;  %v774_v25 = vmul.f32 %v1677_v21, %v1677_v21 }
 0x1eb   : > { %v777_v48 = vmul.f32 %v1664_v14, %v1664_v14 }
 0x1ec   : > { %v1191_v41 = vpop.f32.mrb[4].mxu1  ;;  %v775_v50 = vmul.f32 %v1674_v19, %v1674_v19 }
 0x1ed   : > { %v675_v8 = vpop.f32.mrb[5].mxu1  ;;  %788 = vadd.xlane.f32.xlu1 %v771_v9  ;;  %v684_v24 = vadd.f32 %v1191_v41, %v1631_v47 }
 0x1ee   : > { %v1192_v11 = vpop.f32.mrb[6].mxu1  ;;  %786 = vadd.xlane.f32.xlu0 %v770_v44  ;;  %v676_v30 = vadd.f32 %v1631_v47, %v675_v8 }
 0x1ef   : > { %v678_v12 = vpop.f32.mrb[7].mxu1  ;;  %v687_v56 = vadd.f32 %v1192_v11, %v1631_v47  ;;  %v1696_v29 = vadd.f32 %v684_v24, %v1581_v63 }
 0x1f0   : > { %v679_v28 = vadd.f32 %v1631_v47, %v678_v12  ;;  %v1705_v32 = vadd.f32 %v676_v30, %v1584_v3 }
 0x1f1   : > { %736 = vadd.xlane.f32.xlu1 %v1664_v14  ;;  %v1692_v26 = vadd.f32 %v687_v56, %v1588_v6  ;;  %v780_v6 = vmul.f32 %v1696_v29, %v1696_v29 }
 0x1f2   : > { %734 = vadd.xlane.f32.xlu0 %v1668_v16  ;;  %v1702_v31 = vadd.f32 %v679_v28, %v1593_v13  ;;  %v778_v37 = vmul.f32 %v1705_v32, %v1705_v32 }
 0x1f3   : > { %v781_v63 = vmul.f32 %v1692_v26, %v1692_v26 }
 0x1f4   : > { %v1195_v18 = vpop.f32.mrb[8].mxu1  ;;  %v779_v13 = vmul.f32 %v1702_v31, %v1702_v31 }
 0x1f5   : > { %v691_v20 = vpop.f32.mrb[9].mxu1  ;;  %732 = vadd.xlane.f32.xlu1 %v1674_v19  ;;  %v700_v3 = vadd.f32 %v1195_v18, %v1631_v47 }
 0x1f6   : > { %v1196_v53 = vpop.f32.mrb[10].mxu1  ;;  %730 = vadd.xlane.f32.xlu0 %v1677_v21  ;;  %v692_v45 = vadd.f32 %v1631_v47, %v691_v20 }
 0x1f7   : > { %v694_v22 = vpop.f32.mrb[11].mxu1  ;;  %v703_v33 = vadd.f32 %v1196_v53, %v1631_v47  ;;  %v1724_v42 = vadd.f32 %v700_v3, %v1601_v27  ;;  %v1762_v3 = vld [vmem:[%s1941_s5] ss:$0 sm:$0xff] }
 0x1f8   : > { %v695_v40 = vadd.f32 %v1631_v47, %v694_v22  ;;  %v1733_v49 = vadd.f32 %v692_v45, %v1605_v35 }
 0x1f9   : > { %800 = vadd.xlane.f32.xlu1 %v777_v48  ;;  %v1720_v39 = vadd.f32 %v703_v33, %v1609_v43 }
 0x1fa   : > { %798 = vadd.xlane.f32.xlu0 %v776_v23  ;;  %v1730_v46 = vadd.f32 %v695_v40, %v1616_v54  ;;  %v782_v43 = vmul.f32 %v1733_v49, %v1733_v49  ;;  %v784_v54 = vmul.f32 %v1724_v42, %v1724_v42 }
 0x1fb   : > { %v785_v47 = vmul.f32 %v1720_v39, %v1720_v39 }
 0x1fc   : > { %v783_v27 = vmul.f32 %v1730_v46, %v1730_v46 }
 0x1fd   : > { %796 = vadd.xlane.f32.xlu1 %v775_v50 }
 0x1fe   : > { %794 = vadd.xlane.f32.xlu0 %v774_v25 }
 0x201   : > { %744 = vadd.xlane.f32.xlu1 %v1692_v26 }
 0x202   : > { %742 = vadd.xlane.f32.xlu0 %v1696_v29 }
 0x205   : > { %740 = vadd.xlane.f32.xlu1 %v1702_v31 }
 0x206   : > { %738 = vadd.xlane.f32.xlu0 %v1705_v32 }
 0x209   : > { %808 = vadd.xlane.f32.xlu1 %v781_v63 }
 0x20a   : > { %806 = vadd.xlane.f32.xlu0 %v780_v6 }
 0x20d   : > { %804 = vadd.xlane.f32.xlu1 %v779_v13 }
 0x20e   : > { %802 = vadd.xlane.f32.xlu0 %v778_v37 }
 0x211   : > { %752 = vadd.xlane.f32.xlu1 %v1720_v39 }
 0x212   : > { %750 = vadd.xlane.f32.xlu0 %v1724_v42 }
 0x215   : > { %748 = vadd.xlane.f32.xlu1 %v1730_v46 }
 0x216   : > { %746 = vadd.xlane.f32.xlu0 %v1733_v49 }
 0x219   : > { %812 = vadd.xlane.f32.xlu1 %v783_v27 }
 0x21a   : > { %810 = vadd.xlane.f32.xlu0 %v782_v43 }
 0x21d   : > { %816 = vadd.xlane.f32.xlu1 %v785_v47 }
 0x21e   : > { %814 = vadd.xlane.f32.xlu0 %v784_v54 }
 0x26e   : > { %v727_v35 = vpop.xlane.xlu1 %726 }
 0x26f   : > { %v723_v51 = vpop.xlane.xlu0 %722  ;;  %v756_v52 = vmul.f32 0.015625, %v727_v35 }
 0x270   : > { %v1745_v5 = vmul.f32 0.015625, %v723_v51 }
 0x271   : > { %v836_v60 = vmul.f32 %v756_v52, %v756_v52  ;;  %v884_v33 = vsub.f32 %v1636_v58, %v756_v52  ;;  %v1774_v58 = vld [vmem:[%s1942_s6] ss:$0 sm:$0xff] }
 0x272   : > { %v729_v55 = vpop.xlane.xlu1 %728  ;;  %v834_v17 = vmul.f32 %v1745_v5, %v1745_v5 }
 0x273   : > { %v757_v57 = vmul.f32 0.015625, %v729_v55  ;;  %v791_v59 = vpop.xlane.xlu0 %790 }
 0x274   : > { %v820_v62 = vmul.f32 0.015625, %v791_v59 }
 0x275   : > { %v837_v4 = vmul.f32 %v757_v57, %v757_v57  ;;  %v885_v54 = vsub.f32 %v1645_v0, %v757_v57 }
 0x276   : > { %v852_v1 = vsub.f32 %v820_v62, %v836_v60  ;;  %v793_v2 = vpop.xlane.xlu1 %792 }
 0x277   : > { %v821_v36 = vmul.f32 0.015625, %v793_v2  ;;  %v725_v34 = vpop.xlane.xlu0 %724 }
 0x278   : > { %v868_v41 = vmax.f32 %v852_v1, 0.0  ;;  %v1747_v7 = vmul.f32 0.015625, %v725_v34 }
 0x279   : > { %v853_v8 = vsub.f32 %v821_v36, %v837_v4 }
 0x27a   : > { %v900_v9 = vadd.f32 1e-05, %v868_v41  ;;  %v835_v10 = vmul.f32 %v1747_v7, %v1747_v7  ;;  %v789_v11 = vpop.xlane.xlu1 %788  ;;  %v883_v1 = vsub.f32 %v1652_v38, %v1747_v7  ;;  %v882_v38 = vsub.f32 %v1640_v61, %v1745_v5 }
 0x27b   : > { %v869_v44 = vmax.f32 %v853_v8, 0.0  ;;  %v819_v12 = vmul.f32 0.015625, %v789_v11  ;;  %v787_v15 = vpop.xlane.xlu0 %786 }
 0x27c   : > { %1296 = vrsqrt.f32 %v900_v9  ;;  %v818_v18 = vmul.f32 0.015625, %v787_v15 }
 0x27d   : > { %v901_v20 = vadd.f32 1e-05, %v869_v44  ;;  %v851_v53 = vsub.f32 %v819_v12, %v835_v10 }
 0x27e   : > { %v850_v22 = vsub.f32 %v818_v18, %v834_v17  ;;  %v737_v48 = vpop.xlane.xlu1 %736 }
 0x27f   : > { %1298 = vrsqrt.f32 %v901_v20  ;;  %v867_v23 = vmax.f32 %v851_v53, 0.0  ;;  %v735_v56 = vpop.xlane.xlu0 %734  ;;  %v1753_v30 = vmul.f32 0.015625, %v737_v48 }
 0x280   : > { %v866_v50 = vmax.f32 %v850_v22, 0.0  ;;  %v1756_v6 = vmul.f32 0.015625, %v735_v56 }
 0x281   : > { %v899_v24 = vadd.f32 1e-05, %v867_v23  ;;  %v841_v45 = vmul.f32 %v1753_v30, %v1753_v30 }
 0x282   : > { %v898_v25 = vadd.f32 1e-05, %v866_v50  ;;  %v733_v28 = vpop.xlane.xlu1 %732  ;;  %v840_v35 = vmul.f32 %v1756_v6, %v1756_v6 }
 0x283   : > { %1300 = vrsqrt.f32 %v899_v24  ;;  %v731_v63 = vpop.xlane.xlu0 %730  ;;  %v1768_v27 = vmul.f32 0.015625, %v733_v28 }
 0x284   : > { %1302 = vrsqrt.f32 %v898_v25  ;;  %v1778_v51 = vmul.f32 0.015625, %v731_v63 }
 0x285   : > { %v839_v4 = vmul.f32 %v1768_v27, %v1768_v27 }
 0x286   : > { %v1297_v13 = vpop.eup %1296  ;;  %v801_v37 = vpop.xlane.xlu1 %800  ;;  %v838_v9 = vmul.f32 %v1778_v51, %v1778_v51 }
 0x287   : > { %v932_v40 = vmul.f32 %v1297_v13, %v884_v33  ;;  %v825_v43 = vmul.f32 0.015625, %v801_v37  ;;  %v799_v47 = vpop.xlane.xlu0 %798 }
 0x288   : > { %v824_v52 = vmul.f32 0.015625, %v799_v47 }
 0x289   : > { %v1299_v55 = vpop.eup %1298  ;;  %v955_v59 = vmul.f32 %v1762_v3, %v932_v40  ;;  %v857_v60 = vsub.f32 %v825_v43, %v841_v45 }
 0x28a   : > { %v933_v62 = vmul.f32 %v1299_v55, %v885_v54  ;;  %v856_v0 = vsub.f32 %v824_v52, %v840_v35  ;;  %v797_v57 = vpop.xlane.xlu1 %796  ;;  %v889_v52 = vsub.f32 %v1664_v14, %v1753_v30 }
 0x28b   : > { %v978_v2 = vadd.f32 %v1774_v58, %v955_v59  ;;  %v873_v36 = vmax.f32 %v857_v60, 0.0  ;;  %v823_v34 = vmul.f32 0.015625, %v797_v57  ;;  %v795_v41 = vpop.xlane.xlu0 %794 }
 0x28c   : > { %v956_v8 = vmul.f32 %v1762_v3, %v933_v62  ;;  %v872_v10 = vmax.f32 %v856_v0, 0.0  ;;  %v822_v11 = vmul.f32 0.015625, %v795_v41 }
 0x28d   : > { %v1301_v44 = vpop.eup %1300  ;;  %994 = vst [vmem:[%s1791_s20 + $0x10] sm:$0xff] %v978_v2  ;;  %v905_v7 = vadd.f32 1e-05, %v873_v36  ;;  %v855_v12 = vsub.f32 %v823_v34, %v839_v4  ;;  %v887_v2 = vsub.f32 %v1674_v19, %v1768_v27  ;;  %v886_v19 = vsub.f32 %v1677_v21, %v1778_v51 }
 0x28e   : > { %v1303_v15 = vpop.eup %1302  ;;  %v979_v17 = vadd.f32 %v1774_v58, %v956_v8  ;;  %v931_v18 = vmul.f32 %v1301_v44, %v883_v1  ;;  %v904_v20 = vadd.f32 1e-05, %v872_v10  ;;  %v854_v53 = vsub.f32 %v822_v11, %v838_v9  ;;  %v745_v22 = vpop.xlane.xlu1 %744 }
 0x28f   : > { %v930_v48 = vmul.f32 %v1303_v15, %v882_v38  ;;  %1304 = vrsqrt.f32 %v905_v7  ;;  %v871_v23 = vmax.f32 %v855_v12, 0.0  ;;  %v743_v56 = vpop.xlane.xlu0 %742  ;;  %v1800_v13 = vmul.f32 0.015625, %v745_v22 }
 0x290   : > { %995 = vst [vmem:[%s1791_s20 + $0x18] sm:$0xff] %v979_v17  ;;  %v954_v61 = vmul.f32 %v1762_v3, %v931_v18  ;;  %1306 = vrsqrt.f32 %v904_v20  ;;  %v870_v5 = vmax.f32 %v854_v53, 0.0  ;;  %v1803_v40 = vmul.f32 0.015625, %v743_v56 }
 0x291   : > { %v953_v50 = vmul.f32 %v1762_v3, %v930_v48  ;;  %v903_v24 = vadd.f32 1e-05, %v871_v23  ;;  %v845_v43 = vmul.f32 %v1800_v13, %v1800_v13  ;;  %v888_v1 = vsub.f32 %v1668_v16, %v1756_v6 }
 0x292   : > { %v977_v25 = vadd.f32 %v1774_v58, %v954_v61  ;;  %v902_v28 = vadd.f32 1e-05, %v870_v5  ;;  %v741_v63 = vpop.xlane.xlu1 %740  ;;  %v844_v55 = vmul.f32 %v1803_v40, %v1803_v40 }
 0x293   : > { %v976_v33 = vadd.f32 %v1774_v58, %v953_v50  ;;  %1308 = vrsqrt.f32 %v903_v24  ;;  %v739_v37 = vpop.xlane.xlu0 %738  ;;  %v1808_v47 = vmul.f32 0.015625, %v741_v63 }
 0x294   : > { %993 = vst [vmem:[%s1791_s20 + $0x8] sm:$0xff] %v977_v25  ;;  %1310 = vrsqrt.f32 %v902_v28  ;;  %v1814_v59 = vmul.f32 0.015625, %v739_v37 }
 0x295   : > { %992 = vst [vmem:[%s1791_s20] sm:$0xff] %v976_v33  ;;  %v843_v14 = vmul.f32 %v1808_v47, %v1808_v47 }
 0x296   : > { %v809_v45 = vpop.xlane.xlu1 %808  ;;  %v842_v16 = vmul.f32 %v1814_v59, %v1814_v59 }
 0x297   : > { %v829_v54 = vmul.f32 0.015625, %v809_v45  ;;  %v807_v35 = vpop.xlane.xlu0 %806 }
 0x298   : > { %v828_v60 = vmul.f32 0.015625, %v807_v35 }
 0x299   : > { %v1305_v62 = vpop.eup %1304  ;;  %v861_v0 = vsub.f32 %v829_v54, %v845_v43 }
 0x29a   : > { %v1307_v57 = vpop.eup %1306  ;;  %v937_v4 = vmul.f32 %v1305_v62, %v889_v52  ;;  %v860_v36 = vsub.f32 %v828_v60, %v844_v55  ;;  %v805_v34 = vpop.xlane.xlu1 %804  ;;  %v893_v55 = vsub.f32 %v1692_v26, %v1800_v13 }
 0x29b   : > { %v936_v41 = vmul.f32 %v1307_v57, %v888_v1  ;;  %v877_v30 = vmax.f32 %v861_v0, 0.0  ;;  %v827_v8 = vmul.f32 0.015625, %v805_v34  ;;  %v803_v9 = vpop.xlane.xlu0 %802  ;;  %v892_v57 = vsub.f32 %v1696_v29, %v1803_v40 }
 0x29c   : > { %v960_v10 = vmul.f32 %v1762_v3, %v937_v4  ;;  %v876_v6 = vmax.f32 %v860_v36, 0.0  ;;  %v826_v11 = vmul.f32 0.015625, %v803_v9  ;;  %v891_v36 = vsub.f32 %v1702_v31, %v1808_v47 }
 0x29d   : > { %v1309_v44 = vpop.eup %1308  ;;  %v959_v27 = vmul.f32 %v1762_v3, %v936_v41  ;;  %v909_v38 = vadd.f32 1e-05, %v877_v30  ;;  %v859_v7 = vsub.f32 %v827_v8, %v843_v14  ;;  %v890_v31 = vsub.f32 %v1705_v32, %v1814_v59 }
 0x29e   : > { %v1311_v12 = vpop.eup %1310  ;;  %v983_v15 = vadd.f32 %v1774_v58, %v960_v10  ;;  %v935_v17 = vmul.f32 %v1309_v44, %v887_v2  ;;  %v908_v18 = vadd.f32 1e-05, %v876_v6  ;;  %v858_v20 = vsub.f32 %v826_v11, %v842_v16  ;;  %v753_v53 = vpop.xlane.xlu1 %752 }
 0x29f   : > { %v982_v22 = vadd.f32 %v1774_v58, %v959_v27  ;;  %v934_v48 = vmul.f32 %v1311_v12, %v886_v19  ;;  %1312 = vrsqrt.f32 %v909_v38  ;;  %v875_v23 = vmax.f32 %v859_v7, 0.0  ;;  %v751_v56 = vpop.xlane.xlu0 %750 }
 0x2a0   : > { %999 = vst [vmem:[%s1791_s20 + $0x38] sm:$0xff] %v983_v15  ;;  %v958_v21 = vmul.f32 %v1762_v3, %v935_v17  ;;  %1314 = vrsqrt.f32 %v908_v18  ;;  %v874_v51 = vmax.f32 %v858_v20, 0.0  ;;  %v1838_v43 = vmul.f32 0.015625, %v753_v53 }
 0x2a1   : > { %998 = vst [vmem:[%s1791_s20 + $0x30] sm:$0xff] %v982_v22  ;;  %v957_v61 = vmul.f32 %v1762_v3, %v934_v48  ;;  %v907_v5 = vadd.f32 1e-05, %v875_v23  ;;  %v1842_v60 = vmul.f32 0.015625, %v751_v56 }
 0x2a2   : > { %v981_v50 = vadd.f32 %v1774_v58, %v958_v21  ;;  %v906_v24 = vadd.f32 1e-05, %v874_v51  ;;  %v749_v25 = vpop.xlane.xlu1 %748  ;;  %v849_v26 = vmul.f32 %v1838_v43, %v1838_v43 }
 0x2a3   : > { %v980_v28 = vadd.f32 %v1774_v58, %v957_v61  ;;  %1316 = vrsqrt.f32 %v907_v5  ;;  %v747_v63 = vpop.xlane.xlu0 %746  ;;  %v767_v33 = vmul.f32 0.015625, %v749_v25  ;;  %v848_v29 = vmul.f32 %v1842_v60, %v1842_v60 }
 0x2a4   : > { %997 = vst [vmem:[%s1791_s20 + $0x28] sm:$0xff] %v981_v50  ;;  %1318 = vrsqrt.f32 %v906_v24  ;;  %v766_v37 = vmul.f32 0.015625, %v747_v63  ;;  %v897_v24 = vsub.f32 %v1720_v39, %v1838_v43  ;;  %v896_v63 = vsub.f32 %v1724_v42, %v1842_v60 }
 0x2a5   : > { %996 = vst [vmem:[%s1791_s20 + $0x20] sm:$0xff] %v980_v28  ;;  %v847_v54 = vmul.f32 %v767_v33, %v767_v33  ;;  %v895_v56 = vsub.f32 %v1730_v46, %v767_v33 }
 0x2a6   : > { %v813_v45 = vpop.xlane.xlu1 %812  ;;  %v846_v62 = vmul.f32 %v766_v37, %v766_v37  ;;  %v894_v51 = vsub.f32 %v1733_v49, %v766_v37 }
 0x2a7   : > { %v831_v35 = vmul.f32 0.015625, %v813_v45  ;;  %v811_v52 = vpop.xlane.xlu0 %810 }
 0x2a8   : > { %v830_v1 = vmul.f32 0.015625, %v811_v52 }
 0x2a9   : > { %v1313_v0 = vpop.eup %1312  ;;  %v863_v2 = vsub.f32 %v831_v35, %v847_v54 }
 0x2aa   : > { %v1315_v4 = vpop.eup %1314  ;;  %v941_v34 = vmul.f32 %v1313_v0, %v893_v55  ;;  %v862_v41 = vsub.f32 %v830_v1, %v846_v62  ;;  %v817_v14 = vpop.xlane.xlu1 %816 }
 0x2ab   : > { %v940_v30 = vmul.f32 %v1315_v4, %v892_v57  ;;  %v879_v13 = vmax.f32 %v863_v2, 0.0  ;;  %v833_v8 = vmul.f32 0.015625, %v817_v14  ;;  %v815_v9 = vpop.xlane.xlu0 %814 }
 0x2ac   : > { %v964_v10 = vmul.f32 %v1762_v3, %v941_v34  ;;  %v878_v40 = vmax.f32 %v862_v41, 0.0  ;;  %v832_v16 = vmul.f32 0.015625, %v815_v9 }
 0x2ad   : > { %v1317_v6 = vpop.eup %1316  ;;  %v963_v47 = vmul.f32 %v1762_v3, %v940_v30  ;;  %v911_v11 = vadd.f32 1e-05, %v879_v13  ;;  %v865_v44 = vsub.f32 %v833_v8, %v849_v26 }
 0x2ae   : > { %v1319_v19 = vpop.eup %1318  ;;  %v987_v27 = vadd.f32 %v1774_v58, %v964_v10  ;;  %v939_v38 = vmul.f32 %v1317_v6, %v891_v36  ;;  %v910_v7 = vadd.f32 1e-05, %v878_v40  ;;  %v864_v12 = vsub.f32 %v832_v16, %v848_v29 }
 0x2af   : > { %v986_v15 = vadd.f32 %v1774_v58, %v963_v47  ;;  %v938_v17 = vmul.f32 %v1319_v19, %v890_v31  ;;  %1320 = vrsqrt.f32 %v911_v11  ;;  %v881_v18 = vmax.f32 %v865_v44, 0.0 }
 0x2b0   : > { %1003 = vst [vmem:[%s1791_s20 + $0x58] sm:$0xff] %v987_v27  ;;  %v962_v32 = vmul.f32 %v1762_v3, %v939_v38  ;;  %1322 = vrsqrt.f32 %v910_v7  ;;  %v880_v59 = vmax.f32 %v864_v12, 0.0 }
 0x2b1   : > { %1002 = vst [vmem:[%s1791_s20 + $0x50] sm:$0xff] %v986_v15  ;;  %v961_v20 = vmul.f32 %v1762_v3, %v938_v17  ;;  %v913_v53 = vadd.f32 1e-05, %v881_v18 }
 0x2b2   : > { %v985_v22 = vadd.f32 %v1774_v58, %v962_v32  ;;  %v912_v48 = vadd.f32 1e-05, %v880_v59 }
 0x2b3   : > { %v984_v23 = vadd.f32 %v1774_v58, %v961_v20  ;;  %1324 = vrsqrt.f32 %v913_v53 }
 0x2b4   : > { %1001 = vst [vmem:[%s1791_s20 + $0x48] sm:$0xff] %v985_v22  ;;  %1326 = vrsqrt.f32 %v912_v48 }
 0x2b5   : > { %1000 = vst [vmem:[%s1791_s20 + $0x40] sm:$0xff] %v984_v23 }
 0x2b9   : > { %v1321_v21 = vpop.eup %1320 }
 0x2ba   : > { %v1323_v61 = vpop.eup %1322  ;;  %v943_v5 = vmul.f32 %v1321_v21, %v895_v56 }
 0x2bb   : > { %v942_v50 = vmul.f32 %v1323_v61, %v894_v51 }
 0x2bc   : > { %v966_v25 = vmul.f32 %v1762_v3, %v943_v5 }
 0x2bd   : > { %v1325_v28 = vpop.eup %1324  ;;  %v965_v46 = vmul.f32 %v1762_v3, %v942_v50 }
 0x2be   : > { %v1327_v33 = vpop.eup %1326  ;;  %v989_v49 = vadd.f32 %v1774_v58, %v966_v25  ;;  %v945_v37 = vmul.f32 %v1325_v28, %v897_v24 }
 0x2bf   : > { %v988_v45 = vadd.f32 %v1774_v58, %v965_v46  ;;  %v944_v54 = vmul.f32 %v1327_v33, %v896_v63 }
 0x2c0   : > { %1005 = vst [vmem:[%s1791_s20 + $0x68] sm:$0xff] %v989_v49  ;;  %v968_v39 = vmul.f32 %v1762_v3, %v945_v37 }
 0x2c1   : > { %1004 = vst [vmem:[%s1791_s20 + $0x60] sm:$0xff] %v988_v45  ;;  %v967_v42 = vmul.f32 %v1762_v3, %v944_v54 }
 0x2c2   : > { %v991_v43 = vadd.f32 %v1774_v58, %v968_v39 }
 0x2c3   : > { %v990_v35 = vadd.f32 %v1774_v58, %v967_v42 }
 0x2c4   : > { %1007 = vst [vmem:[%s1791_s20 + $0x78] sm:$0xff] %v991_v43 }
 0x2c5   : > { %1006 = vst [vmem:[%s1791_s20 + $0x70] sm:$0xff] %v990_v35 }
 0x2c6   : > { %1341 = shalt.err (!%p1338_p3)
}
 0x2c7   : > { %s1342_s14 = scalar_lea.hbm %s1886_s8, 2048  ;;  %s1346_s19 = scalar_lea.hbm %s1943_s7, 4096 }
 0x2c8   : > { %p1343_p4 = scmp.ne.s32.totalorder %s1886_s8, %s1342_s14  ;;  %p1347_p9 = scmp.lt.u32.totalorder %s1886_s8, %s1943_s7 }
 0x2c9   : > { %p1348_p10 = scmp.lt.u32.totalorder %s1346_s19, %s1342_s14  ;;  %p1350_p12 = scmp.lt.u32.totalorder %s1342_s14, %s1886_s8 }
 0x2ca   : > { %p1344_p7 = pnand %p1343_p4, %p1473_p5 }
 0x2cb   : > { %p1349_p11 = por %p1348_p10, %p1347_p9 }
 0x2cc   : > { %p1345_p8 = pneg %p1344_p7 }
 0x2cd   : > { %p1351_p13 = por %p1350_p12, %p1349_p11 }
 0x2cf   : > { %p1352_p0 = pnand %p1351_p13, %p1345_p8 }
 0x2d1   : > { %1355 = shalt.err (!%p1352_p0)
}
 0x2d2   : > { %s1393_s23 = smov 128   ;;  %s1394_s29 = smov 8  }
 0x2d3   : > { %1213 = dma.vmem_to_hbm [thread:$0]  (%p1473_p5), %s1888_s22, 2048, %s1886_s8, %s1895_s28, %s1393_s23, %s1393_s23, %s1394_s29  }
 0x2d4 PF: > { %p1219_p1 = scmp.ge.s32.totalorder %s1390_s27, 2  ;;  %s1037_s9 = sand.u32 1, %s1378_s24  }
 0x2d5   : > { %s1038_s13 = scalar_lea.sflag [#allocation3], %s1037_s9 }
 0x2d6   : > { %p1216_p2 = pnand %p1219_p1, %p1477_p6 }
 0x2d8   : > { %1373 = dma.done.wait (!%p1216_p2), %s1038_s13, 2048  }
 0x2d9   : > { %1375 = vsyncadd (!%p1216_p2), %s1038_s13, 4294965248  ;;  %p17_p3 = scmp.ge.s32.totalorder %s1460_s30, 4   ;;  %s1946_s24 = smov %s1382_s25 }
 0x2da   : > { %s1947_s25 = smov %s1386_s26  ;;  %s1948_s26 = smov %s1471_s10 }
 0x2db   : > { %s1949_s27 = smov %s1460_s30  ;;  %19 = sbr.rel (!%p17_p3) target bundleno = 3 (0x3), region = 83 }
 0x2e2   :  { %1043 = vsyncpa [#allocation3], 1 }
 0x2e3   :  { %1045 = vsyncpa [#allocation3 + $0x1], 1 }

// kernel: tpu_custom_call.1
= control target key start
LH: loop header
LB: loop body
LE: loop exit
PB: predicated region body
PF: predicated region fallthrough
CT: control target
= control target key end

     0   :  { %12 = vsyncpa [#allocation3], 0  ;;  %s1936_s0 = inlined_call_operand.vmem [shape: f32[256,32], index: 0, kind: input, shape index: {}]   ;;  %s1937_s1 = inlined_call_operand.vmem [shape: bf16[32,128], index: 1, kind: input, shape index: {}]   ;;  %s1938_s2 = inlined_call_operand.vmem [shape: f32[1,128], index: 2, kind: input, shape index: {}]   ;;  %s1939_s3 = inlined_call_operand.vmem [shape: bf16[128,128], index: 3, kind: input, shape index: {}]   ;;  %s1940_s4 = inlined_call_operand.vmem [shape: f32[1,128], index: 4, kind: input, shape index: {}]   ;;  %s1941_s5 = inlined_call_operand.vmem [shape: f32[1,128], index: 5, kind: input, shape index: {}]   ;;  %s1942_s6 = inlined_call_operand.vmem [shape: f32[1,128], index: 6, kind: input, shape index: {}]   ;;  %s1943_s7 = inlined_call_operand.hbm [shape: f32[256,128], index: 7, kind: output, shape index: {}]  }
   0x1   :  { %14 = vsyncpa [#allocation3 + $0x1], 0  ;;  %s1435_s24 = smov 0   ;;  %s1437_s25 = smov 0  }
   0x2   :  { %s1439_s26 = smov 0   ;;  %s1441_s27 = smov 0  }
   0x3 LB: > { %s1456_s28 = sadd.s32 4294967295, %s1390_s27   ;;  %s1084_s29 = sadd.s32 4294967294, %s1390_s27   ;;  %s1390_s27 = sphi %s1441_s27, %s1949_s27   ;;  %s1386_s26 = sphi %s1439_s26, %s1948_s26   ;;  %s1382_s25 = sphi %s1437_s25, %s1947_s25   ;;  %s1378_s24 = sphi %s1435_s24, %s1946_s24  }
   0x4   : > { %s1460_s30 = sadd.s32 1, %s1390_s27   ;;  %s179_s8 = sadd.s32 1, %s1386_s26 }
   0x5   : > { %s176_s9 = ssub.s32 %s1390_s27, %s1460_s30  ;;  %p189_p0 = scmp.ne.s32.totalorder %s1386_s26, %s1382_s25 }
   0x6   : > { %p177_p1 = scmp.eq.s32.totalorder %s176_s9, 0  ;;  %p190_p2 = scmp.eq.s32.totalorder %s1456_s28, 1 }
   0x7   : > { %p195_p3 = scmp.ne.s32.totalorder %s1382_s25, %s1378_s24  ;;  %p196_p4 = scmp.eq.s32.totalorder %s1084_s29, 1 }
   0x8   : > { %s1471_s10 = scalar_select %p177_p1, %s1386_s26, %s179_s8  }
   0x9   : > { %p1473_p5 = por %p190_p2, %p189_p0  ;;  %p1477_p6 = por %p196_p4, %p195_p3 }
   0xa   : > { %p1087_p7 = scmp.ge.s32.totalorder %s1390_s27, 1  ;;  %p241_p8 = scmp.lt.s32.totalorder %s1390_s27, 3 }
   0xc   : > { %p242_p9 = pnand %p1087_p7, %p241_p8 }
   0xd   : > { %v1254_v0 = vld [vmem:[%s1937_s1] sm:$0xff] (!%p242_p9)   ;;  %s1089_s15 = sshll.u32 (!%p242_p9), %s1456_s28, 4  ;;  %v1255_v1 = vld [vmem:[%s1937_s1 + $0x8] sm:$0xff] (!%p242_p9)   ;;  %vm328_vm0 = vcmask (!%p242_p9), 261120   ;;  %v1258_v28 = vld [vmem:[%s1939_s3 + $0x10] sm:$0xff] (!%p242_p9)   ;;  %s270_s14 = sand.u32 (!%p242_p9), 1, %s1382_s25  }
   0xe   : > { %245 = sbr.rel (%p242_p9) target bundleno = 724 (0x2d4), region = 48  ;;  %p274_p10 = scmp.lt.s32.totalorder (!%p242_p9), %s1089_s15, 31  ;;  %1145 = vmatprep.subr.bf16.mxu0 (!%p242_p9), %v1254_v0  ;;  %v1256_v2 = vld [vmem:[%s1939_s3] sm:$0xff] (!%p242_p9)   ;;  %v1257_v3 = vld [vmem:[%s1939_s3 + $0x8] sm:$0xff] (!%p242_p9)   ;;  %v1259_v29 = vld [vmem:[%s1939_s3 + $0x18] sm:$0xff] (!%p242_p9)  }
   0xf   : > { %1146 = vmatpush3.bf16.msra.mxu0 (!%p242_p9), %v1254_v0  ;;  %1197 = vmatprep.subr.bf16.mxu1 (!%p242_p9), %v1256_v2  ;;  %v1260_v30 = vld [vmem:[%s1939_s3 + $0x20] sm:$0xff] (!%p242_p9)   ;;  %v1261_v31 = vld [vmem:[%s1939_s3 + $0x28] sm:$0xff] (!%p242_p9)   ;;  %v1262_v32 = vld [vmem:[%s1939_s3 + $0x30] sm:$0xff] (!%p242_p9)   ;;  %s1088_s17 = sshll.u32 (!%p242_p9), %s270_s14, 7  ;;  %s1118_s21 = sshll.u32 (!%p242_p9), %s1456_s28, 11 }
  0x10   : > { %1147 = vmatprep.subr.bf16.mxu0 (!%p242_p9), %v1255_v1  ;;  %1205 = vmatpush3.bf16.msra.mxu1 (!%p242_p9), %v1256_v2  ;;  %v1263_v33 = vld [vmem:[%s1939_s3 + $0x38] sm:$0xff] (!%p242_p9)   ;;  %v1546_v34 = vld [vmem:[%s1938_s2] ss:$0 sm:$0xff] (!%p242_p9)  ;;  %s1791_s20 = scalar_lea.vmem (!%p242_p9), [#allocation2], %s1088_s17  ;;  %s1895_s28 = scalar_lea.sflag (!%p242_p9), [#allocation3], %s270_s14 }
  0x11   : > { %1198 = vmatprep.subr.bf16.mxu1 (!%p242_p9), %v1257_v3  ;;  %s1392_s13 = smov (!%p242_p9), [#allocation2]  }
  0x13   : > { %1148 = vmatpush3.bf16.msra.mxu0 (!%p242_p9), %v1255_v1 }
  0x14   : > { %1165 = vmatprep.subr.bf16.mxu0 (!%p242_p9), %v1256_v2  ;;  %1206 = vmatpush3.bf16.msra.mxu1 (!%p242_p9), %v1257_v3 }
  0x15   : > { %s1951_s15 = smov (!%p274_p10, %s1089_s15), 31  ;;  %1199 = vmatprep.subr.bf16.mxu1 %v1258_v28 }
  0x16   : > { %s1090_s22 = sshll.u32 %s1951_s15, 3  ;;  %s1332_s15 = sshll.u32 %s1392_s13, 4  ;;  %s1333_s15 = int_to_ptr.vmem [resolvable:$false] %s1332_s15 }
  0x17   : > { %s1499_s8 = scalar_lea.vmem %s1936_s0, %s1090_s22  ;;  %s1022_s22 = sshll.u32 %s1791_s20, 4  ;;  %s1888_s22 = int_to_ptr.vmem [resolvable:$true] %s1022_s22 }
  0x18   : > { %v281_v4 = vld [vmem:[%s1499_s8] sm:$0xff]  ;;  %v282_v5 = vld [vmem:[%s1499_s8 + $0x8] sm:$0xff]  ;;  %v283_v6 = vld [vmem:[%s1499_s8 + $0x10] sm:$0xff]  ;;  %1207 = vmatpush3.bf16.msra.mxu1 %v1258_v28  ;;  %s1328_s9 = scalar_lea.vmem %s1888_s22, 2048  ;;  %s1334_s16 = scalar_lea.vmem %s1333_s15, 4096 }
  0x19   : > { %v297_v7 = vpack.c.bf16 %v282_v5, %v281_v4  ;;  %v284_v8 = vld [vmem:[%s1499_s8 + $0x18] sm:$0xff]  ;;  %v285_v9 = vld [vmem:[%s1499_s8 + $0x20] sm:$0xff]  ;;  %v286_v10 = vld [vmem:[%s1499_s8 + $0x28] sm:$0xff]  ;;  %1200 = vmatprep.subr.bf16.mxu1 %v1259_v29  ;;  %p1329_p11 = scmp.ne.s32.totalorder %s1888_s22, %s1328_s9  ;;  %p1335_p0 = scmp.lt.s32.totalorder %s1888_s22, %s1333_s15 }
  0x1a   : > { %v298_v11 = vpack.c.bf16 %v284_v8, %v283_v6  ;;  %v299_v12 = vpack.c.bf16 %v286_v10, %v285_v9  ;;  %v287_v13 = vld [vmem:[%s1499_s8 + $0x30] sm:$0xff]  ;;  %v288_v14 = vld [vmem:[%s1499_s8 + $0x38] sm:$0xff]  ;;  %v289_v15 = vld [vmem:[%s1499_s8 + $0x40] sm:$0xff]  ;;  %p1336_p1 = scmp.lt.s32.totalorder %s1334_s16, %s1328_s9 }
  0x1b   : > { %1149 = vmatprep.mubr.msk.bf16.mxu0 %vm328_vm0, %v297_v7  ;;  %v290_v16 = vld [vmem:[%s1499_s8 + $0x48] sm:$0xff]  ;;  %v300_v17 = vpack.c.bf16 %v288_v14, %v287_v13  ;;  %v291_v19 = vld [vmem:[%s1499_s8 + $0x50] sm:$0xff]  ;;  %v292_v20 = vld [vmem:[%s1499_s8 + $0x58] sm:$0xff]  ;;  %p1330_p12 = pnand %p1329_p11, %p1473_p5 }
  0x1c   : > { %1150 = vmatmul.mubr.msk.bf16.vlgmr.msra.gmra.mrb[0].mxu0 %vm328_vm0, %v298_v11  ;;  %v301_v18 = vpack.c.bf16 %v290_v16, %v289_v15  ;;  %v293_v21 = vld [vmem:[%s1499_s8 + $0x60] sm:$0xff]  ;;  %v294_v22 = vld [vmem:[%s1499_s8 + $0x68] sm:$0xff]  ;;  %v302_v23 = vpack.c.bf16 %v292_v20, %v291_v19  ;;  %v295_v25 = vld [vmem:[%s1499_s8 + $0x70] sm:$0xff]  ;;  %1208 = vmatpush3.bf16.msra.mxu1 %v1259_v29  ;;  %p1337_p2 = por %p1336_p1, %p1335_p0 }
  0x1d   : > { %1153 = vmatprep.mubr.msk.bf16.mxu0 %vm328_vm0, %v299_v12  ;;  %1166 = vmatpush3.bf16.msra.mxu0 %v1256_v2  ;;  %v303_v24 = vpack.c.bf16 %v294_v22, %v293_v21  ;;  %v296_v26 = vld [vmem:[%s1499_s8 + $0x78] sm:$0xff]  ;;  %s1886_s8 = scalar_lea.hbm %s1943_s7, %s1118_s21  ;;  %p1331_p13 = pneg %p1330_p12 }
  0x1e   : > { %1167 = vmatprep.subr.bf16.mxu0 %v1257_v3  ;;  %v304_v27 = vpack.c.bf16 %v296_v26, %v295_v25  ;;  %1201 = vmatprep.subr.bf16.mxu1 %v1260_v30 }
  0x1f   : > { %p1338_p3 = pnand %p1337_p2, %p1331_p13 }
  0x20   : > { %1209 = vmatpush3.bf16.msra.mxu1 %v1260_v30 }
  0x21   : > { %1168 = vmatpush3.bf16.msra.mxu0 %v1257_v3  ;;  %1202 = vmatprep.subr.bf16.mxu1 %v1261_v31 }
  0x22   : > { %1169 = vmatprep.subr.bf16.mxu0 %v1258_v28 }
  0x24   : > { %1154 = vmatmul.mubr.msk.bf16.gmra.mrb[4].mxu0 %vm328_vm0, %v300_v17  ;;  %1210 = vmatpush3.bf16.msra.mxu1 %v1261_v31 }
  0x25   : > { %1157 = vmatprep.mubr.msk.bf16.mxu0 %vm328_vm0, %v301_v18  ;;  %1170 = vmatpush3.bf16.msra.mxu0 %v1258_v28 }
  0x26   : > { %1171 = vmatprep.subr.bf16.mxu0 %v1259_v29  ;;  %1203 = vmatprep.subr.bf16.mxu1 %v1262_v32 }
  0x28   : > { %1211 = vmatpush3.bf16.msra.mxu1 %v1262_v32 }
  0x29   : > { %1172 = vmatpush3.bf16.msra.mxu0 %v1259_v29  ;;  %1204 = vmatprep.subr.bf16.mxu1 %v1263_v33 }
  0x2a   : > { %1173 = vmatprep.subr.bf16.mxu0 %v1260_v30 }
  0x2c   : > { %1158 = vmatmul.mubr.msk.bf16.gmra.mrb[8].mxu0 %vm328_vm0, %v302_v23  ;;  %1212 = vmatpush3.bf16.msra.mxu1 %v1263_v33 }
  0x2d   : > { %1161 = vmatprep.mubr.msk.bf16.mxu0 %vm328_vm0, %v303_v24  ;;  %1174 = vmatpush3.bf16.msra.mxu0 %v1260_v30 }
  0x2e   : > { %1175 = vmatprep.subr.bf16.mxu0 %v1261_v31 }
  0x31   : > { %1176 = vmatpush3.bf16.msra.mxu0 %v1261_v31 }
  0x32   : > { %1177 = vmatprep.subr.bf16.mxu0 %v1262_v32 }
  0x34   : > { %1162 = vmatmul.mubr.msk.bf16.gmra.mrb[12].mxu0 %vm328_vm0, %v304_v27 }
  0x35   : > { %1178 = vmatpush3.bf16.msra.mxu0 %v1262_v32 }
  0x36   : > { %1179 = vmatprep.subr.bf16.mxu0 %v1263_v33 }
  0x39   : > { %1180 = vmatpush3.bf16.msra.mxu0 %v1263_v33 }
  0xef   : > { %v1151_v35 = vpop.f32.mrb[0].mxu0 }
  0xf0   : > { %v1549_v36 = vadd.f32 %v1151_v35, %v1546_v34  ;;  %v387_v37 = vpop.f32.mrb[1].mxu0 }
  0xf1   : > { %v1552_v38 = vadd.f32 %v1546_v34, %v387_v37  ;;  %v1152_v39 = vpop.f32.mrb[2].mxu0 }
  0xf2   : > { %v468_v40 = vmul.f32 0.70710677, %v1549_v36  ;;  %v1556_v41 = vadd.f32 %v1152_v39, %v1546_v34  ;;  %v390_v42 = vpop.f32.mrb[3].mxu0  ;;  %v452_v17 = vmul.f32 0.5, %v1549_v36 }
  0xf3   : > { %v466_v43 = vmul.f32 0.70710677, %v1552_v38  ;;  %v1560_v44 = vadd.f32 %v1546_v34, %v390_v42  ;;  %v450_v14 = vmul.f32 0.5, %v1552_v38 }
  0xf4   : > { %1264 = verf.f32 %v468_v40  ;;  %v469_v45 = vmul.f32 0.70710677, %v1556_v41  ;;  %v453_v11 = vmul.f32 0.5, %v1556_v41 }
  0xf5   : > { %1266 = verf.f32 %v466_v43  ;;  %v467_v46 = vmul.f32 0.70710677, %v1560_v44  ;;  %v451_v15 = vmul.f32 0.5, %v1560_v44 }
  0xf6   : > { %1268 = verf.f32 %v469_v45 }
  0xf7   : > { %1270 = verf.f32 %v467_v46  ;;  %v1155_v47 = vpop.f32.mrb[4].mxu0 }
  0xf8   : > { %v1565_v48 = vadd.f32 %v1155_v47, %v1546_v34  ;;  %v403_v49 = vpop.f32.mrb[5].mxu0 }
  0xf9   : > { %v1568_v50 = vadd.f32 %v1546_v34, %v403_v49  ;;  %v1156_v51 = vpop.f32.mrb[6].mxu0 }
  0xfa   : > { %v472_v52 = vmul.f32 0.70710677, %v1565_v48  ;;  %v1572_v53 = vadd.f32 %v1156_v51, %v1546_v34  ;;  %v406_v54 = vpop.f32.mrb[7].mxu0  ;;  %v456_v49 = vmul.f32 0.5, %v1565_v48 }
  0xfb   : > { %v470_v55 = vmul.f32 0.70710677, %v1568_v50  ;;  %v1576_v56 = vadd.f32 %v1546_v34, %v406_v54  ;;  %v454_v30 = vmul.f32 0.5, %v1568_v50 }
  0xfc   : > { %1272 = verf.f32 %v472_v52  ;;  %v473_v57 = vmul.f32 0.70710677, %v1572_v53  ;;  %v457_v51 = vmul.f32 0.5, %v1572_v53 }
  0xfd   : > { %1274 = verf.f32 %v470_v55  ;;  %v471_v58 = vmul.f32 0.70710677, %v1576_v56  ;;  %v455_v46 = vmul.f32 0.5, %v1576_v56 }
  0xfe   : > { %v1265_v59 = vpop.eup %1264  ;;  %1276 = verf.f32 %v473_v57 }
  0xff   : > { %v1267_v60 = vpop.eup %1266  ;;  %1278 = verf.f32 %v471_v58  ;;  %v1159_v61 = vpop.f32.mrb[8].mxu0  ;;  %v500_v10 = vadd.f32 1.0, %v1265_v59 }
 0x100   : > { %v1269_v62 = vpop.eup %1268  ;;  %v1581_v63 = vadd.f32 %v1159_v61, %v1546_v34  ;;  %v419_v0 = vpop.f32.mrb[9].mxu0  ;;  %v498_v8 = vadd.f32 1.0, %v1267_v60 }
 0x101   : > { %v1271_v1 = vpop.eup %1270  ;;  %v501_v2 = vadd.f32 1.0, %v1269_v62  ;;  %v1584_v3 = vadd.f32 %v1546_v34, %v419_v0  ;;  %v1160_v4 = vpop.f32.mrb[10].mxu0  ;;  %v516_v24 = vmul.f32 %v500_v10, %v452_v17 }
 0x102   : > { %v476_v5 = vmul.f32 0.70710677, %v1581_v63  ;;  %v1588_v6 = vadd.f32 %v1160_v4, %v1546_v34  ;;  %v422_v7 = vpop.f32.mrb[11].mxu0  ;;  %v499_v9 = vadd.f32 1.0, %v1271_v1  ;;  %v514_v21 = vmul.f32 %v498_v8, %v450_v14 }
 0x103   : > { %v474_v12 = vmul.f32 0.70710677, %v1584_v3  ;;  %v1593_v13 = vadd.f32 %v1546_v34, %v422_v7  ;;  %v517_v18 = vmul.f32 %v501_v2, %v453_v11  ;;  %v460_v0 = vmul.f32 0.5, %v1581_v63 }
 0x104   : > { %1280 = verf.f32 %v476_v5  ;;  %v477_v16 = vmul.f32 0.70710677, %v1588_v6  ;;  %v515_v22 = vmul.f32 %v499_v9, %v451_v15  ;;  %v458_v1 = vmul.f32 0.5, %v1584_v3 }
 0x105   : > { %1282 = verf.f32 %v474_v12  ;;  %v475_v19 = vmul.f32 0.70710677, %v1593_v13  ;;  %v531_v33 = vpack.c.bf16 %v517_v18, %v516_v24  ;;  %v459_v9 = vmul.f32 0.5, %v1593_v13 }
 0x106   : > { %v1273_v20 = vpop.eup %1272  ;;  %1284 = verf.f32 %v477_v16  ;;  %v530_v29 = vpack.c.bf16 %v515_v22, %v514_v21 }
 0x107   : > { %v1275_v23 = vpop.eup %1274  ;;  %1286 = verf.f32 %v475_v19  ;;  %v1163_v25 = vpop.f32.mrb[12].mxu0  ;;  %v504_v39 = vadd.f32 1.0, %v1273_v20 }
 0x108   : > { %v1277_v26 = vpop.eup %1276  ;;  %v1601_v27 = vadd.f32 %v1163_v25, %v1546_v34  ;;  %v435_v28 = vpop.f32.mrb[13].mxu0  ;;  %v502_v31 = vadd.f32 1.0, %v1275_v23  ;;  %1181 = vmatprep.mubr.bf16.mxu0 %v530_v29 }
 0x109   : > { %v1279_v32 = vpop.eup %1278  ;;  %v1605_v35 = vadd.f32 %v1546_v34, %v435_v28  ;;  %v1164_v37 = vpop.f32.mrb[14].mxu0  ;;  %v505_v40 = vadd.f32 1.0, %v1277_v26  ;;  %1182 = vmatmul.mubr.bf16.vlgmr.msra.gmra.mrb[16].mxu0 %v531_v33  ;;  %v520_v60 = vmul.f32 %v504_v39, %v456_v49 }
 0x10a   : > { %v480_v42 = vmul.f32 0.70710677, %v1601_v27  ;;  %v1609_v43 = vadd.f32 %v1164_v37, %v1546_v34  ;;  %v438_v45 = vpop.f32.mrb[15].mxu0  ;;  %v503_v47 = vadd.f32 1.0, %v1279_v32  ;;  %v518_v57 = vmul.f32 %v502_v31, %v454_v30 }
 0x10b   : > { %v478_v52 = vmul.f32 0.70710677, %v1605_v35  ;;  %v1616_v54 = vadd.f32 %v1546_v34, %v438_v45  ;;  %v521_v61 = vmul.f32 %v505_v40, %v457_v51  ;;  %v461_v34 = vmul.f32 0.5, %v1588_v6 }
 0x10c   : > { %1288 = verf.f32 %v480_v42  ;;  %v481_v55 = vmul.f32 0.70710677, %v1609_v43  ;;  %v519_v58 = vmul.f32 %v503_v47, %v455_v46  ;;  %v464_v19 = vmul.f32 0.5, %v1601_v27  ;;  %v1631_v47 = vld [vmem:[%s1940_s4] ss:$0 sm:$0xff] }
 0x10d   : > { %1290 = verf.f32 %v478_v52  ;;  %v479_v59 = vmul.f32 0.70710677, %v1616_v54  ;;  %v533_v5 = vpack.c.bf16 %v521_v61, %v520_v60  ;;  %v462_v21 = vmul.f32 0.5, %v1605_v35 }
 0x10e   : > { %v1281_v62 = vpop.eup %1280  ;;  %1292 = verf.f32 %v481_v55  ;;  %v532_v2 = vpack.c.bf16 %v519_v58, %v518_v57  ;;  %v465_v24 = vmul.f32 0.5, %v1609_v43  ;;  %v463_v29 = vmul.f32 0.5, %v1616_v54 }
 0x10f   : > { %v1283_v4 = vpop.eup %1282  ;;  %1294 = verf.f32 %v479_v59  ;;  %v508_v7 = vadd.f32 1.0, %v1281_v62 }
 0x110   : > { %v1285_v8 = vpop.eup %1284  ;;  %1185 = vmatprep.mubr.bf16.mxu1 %v532_v2  ;;  %v506_v10 = vadd.f32 1.0, %v1283_v4 }
 0x111   : > { %v1287_v11 = vpop.eup %1286  ;;  %1186 = vmatmul.mubr.bf16.vlgmr.msra.gmra.mrb[0].mxu1 %v533_v5  ;;  %v509_v12 = vadd.f32 1.0, %v1285_v8  ;;  %v524_v16 = vmul.f32 %v508_v7, %v460_v0 }
 0x112   : > { %v507_v14 = vadd.f32 1.0, %v1287_v11  ;;  %v522_v15 = vmul.f32 %v506_v10, %v458_v1 }
 0x113   : > { %v525_v17 = vmul.f32 %v509_v12, %v461_v34 }
 0x114   : > { %v523_v18 = vmul.f32 %v507_v14, %v459_v9 }
 0x115   : > { %v535_v25 = vpack.c.bf16 %v525_v17, %v524_v16 }
 0x116   : > { %v1289_v20 = vpop.eup %1288  ;;  %v534_v22 = vpack.c.bf16 %v523_v18, %v522_v15 }
 0x117   : > { %v1291_v23 = vpop.eup %1290  ;;  %v512_v26 = vadd.f32 1.0, %v1289_v20 }
 0x118   : > { %v1293_v28 = vpop.eup %1292  ;;  %1189 = vmatprep.mubr.bf16.mxu1 %v534_v22  ;;  %v510_v30 = vadd.f32 1.0, %v1291_v23 }
 0x119   : > { %v1295_v31 = vpop.eup %1294  ;;  %1190 = vmatmul.mubr.bf16.gmra.mrb[4].mxu1 %v535_v25  ;;  %v513_v32 = vadd.f32 1.0, %v1293_v28  ;;  %v528_v33 = vmul.f32 %v512_v26, %v464_v19 }
 0x11a   : > { %v511_v37 = vadd.f32 1.0, %v1295_v31  ;;  %v526_v39 = vmul.f32 %v510_v30, %v462_v21 }
 0x11b   : > { %v529_v40 = vmul.f32 %v513_v32, %v465_v24 }
 0x11c   : > { %v527_v42 = vmul.f32 %v511_v37, %v463_v29 }
 0x11d   : > { %v537_v45 = vpack.c.bf16 %v529_v40, %v528_v33 }
 0x11e   : > { %v536_v46 = vpack.c.bf16 %v527_v42, %v526_v39 }
 0x120   : > { %1193 = vmatprep.mubr.bf16.mxu1 %v536_v46 }
 0x121   : > { %1194 = vmatmul.mubr.bf16.gmra.mrb[8].mxu1 %v537_v45 }
 0x1dc   : > { %v1183_v49 = vpop.f32.mrb[16].mxu0 }
 0x1dd   : > { %v652_v51 = vadd.f32 %v1183_v49, %v1631_v47  ;;  %v643_v52 = vpop.f32.mrb[17].mxu0 }
 0x1de   : > { %v644_v55 = vadd.f32 %v1631_v47, %v643_v52  ;;  %v1184_v57 = vpop.f32.mrb[18].mxu0 }
 0x1df   : > { %v1636_v58 = vadd.f32 %v652_v51, %v1549_v36  ;;  %v655_v59 = vadd.f32 %v1184_v57, %v1631_v47  ;;  %v646_v60 = vpop.f32.mrb[19].mxu0 }
 0x1e0   : > { %v1640_v61 = vadd.f32 %v644_v55, %v1552_v38  ;;  %v647_v1 = vadd.f32 %v1631_v47, %v646_v60 }
 0x1e1   : > { %726 = vadd.xlane.f32.xlu1 %v1636_v58  ;;  %v1645_v0 = vadd.f32 %v655_v59, %v1556_v41  ;;  %v772_v36 = vmul.f32 %v1636_v58, %v1636_v58 }
 0x1e2   : > { %722 = vadd.xlane.f32.xlu0 %v1640_v61  ;;  %v1652_v38 = vadd.f32 %v647_v1, %v1560_v44  ;;  %v770_v44 = vmul.f32 %v1640_v61, %v1640_v61 }
 0x1e3   : > { %v773_v5 = vmul.f32 %v1645_v0, %v1645_v0 }
 0x1e4   : > { %v1187_v62 = vpop.f32.mrb[0].mxu1  ;;  %v771_v9 = vmul.f32 %v1652_v38, %v1652_v38 }
 0x1e5   : > { %v659_v2 = vpop.f32.mrb[1].mxu1  ;;  %728 = vadd.xlane.f32.xlu1 %v1645_v0  ;;  %v668_v10 = vadd.f32 %v1187_v62, %v1631_v47 }
 0x1e6   : > { %v1188_v4 = vpop.f32.mrb[2].mxu1  ;;  %790 = vadd.xlane.f32.xlu0 %v772_v36  ;;  %v660_v17 = vadd.f32 %v1631_v47, %v659_v2 }
 0x1e7   : > { %v662_v34 = vpop.f32.mrb[3].mxu1  ;;  %v671_v7 = vadd.f32 %v1188_v4, %v1631_v47  ;;  %v1668_v16 = vadd.f32 %v668_v10, %v1565_v48 }
 0x1e8   : > { %v663_v15 = vadd.f32 %v1631_v47, %v662_v34  ;;  %v1677_v21 = vadd.f32 %v660_v17, %v1568_v50 }
 0x1e9   : > { %792 = vadd.xlane.f32.xlu1 %v773_v5  ;;  %v1664_v14 = vadd.f32 %v671_v7, %v1572_v53  ;;  %v776_v23 = vmul.f32 %v1668_v16, %v1668_v16 }
 0x1ea   : > { %724 = vadd.xlane.f32.xlu0 %v1652_v38  ;;  %v1674_v19 = vadd.f32 %v663_v15, %v1576_v56  ;;  %v774_v25 = vmul.f32 %v1677_v21, %v1677_v21 }
 0x1eb   : > { %v777_v48 = vmul.f32 %v1664_v14, %v1664_v14 }
 0x1ec   : > { %v1191_v41 = vpop.f32.mrb[4].mxu1  ;;  %v775_v50 = vmul.f32 %v1674_v19, %v1674_v19 }
 0x1ed   : > { %v675_v8 = vpop.f32.mrb[5].mxu1  ;;  %788 = vadd.xlane.f32.xlu1 %v771_v9  ;;  %v684_v24 = vadd.f32 %v1191_v41, %v1631_v47 }
 0x1ee   : > { %v1192_v11 = vpop.f32.mrb[6].mxu1  ;;  %786 = vadd.xlane.f32.xlu0 %v770_v44  ;;  %v676_v30 = vadd.f32 %v1631_v47, %v675_v8 }
 0x1ef   : > { %v678_v12 = vpop.f32.mrb[7].mxu1  ;;  %v687_v56 = vadd.f32 %v1192_v11, %v1631_v47  ;;  %v1696_v29 = vadd.f32 %v684_v24, %v1581_v63 }
 0x1f0   : > { %v679_v28 = vadd.f32 %v1631_v47, %v678_v12  ;;  %v1705_v32 = vadd.f32 %v676_v30, %v1584_v3 }
 0x1f1   : > { %736 = vadd.xlane.f32.xlu1 %v1664_v14  ;;  %v1692_v26 = vadd.f32 %v687_v56, %v1588_v6  ;;  %v780_v6 = vmul.f32 %v1696_v29, %v1696_v29 }
 0x1f2   : > { %734 = vadd.xlane.f32.xlu0 %v1668_v16  ;;  %v1702_v31 = vadd.f32 %v679_v28, %v1593_v13  ;;  %v778_v37 = vmul.f32 %v1705_v32, %v1705_v32 }
 0x1f3   : > { %v781_v63 = vmul.f32 %v1692_v26, %v1692_v26 }
 0x1f4   : > { %v1195_v18 = vpop.f32.mrb[8].mxu1  ;;  %v779_v13 = vmul.f32 %v1702_v31, %v1702_v31 }
 0x1f5   : > { %v691_v20 = vpop.f32.mrb[9].mxu1  ;;  %732 = vadd.xlane.f32.xlu1 %v1674_v19  ;;  %v700_v3 = vadd.f32 %v1195_v18, %v1631_v47 }
 0x1f6   : > { %v1196_v53 = vpop.f32.mrb[10].mxu1  ;;  %730 = vadd.xlane.f32.xlu0 %v1677_v21  ;;  %v692_v45 = vadd.f32 %v1631_v47, %v691_v20 }
 0x1f7   : > { %v694_v22 = vpop.f32.mrb[11].mxu1  ;;  %v703_v33 = vadd.f32 %v1196_v53, %v1631_v47  ;;  %v1724_v42 = vadd.f32 %v700_v3, %v1601_v27  ;;  %v1762_v3 = vld [vmem:[%s1941_s5] ss:$0 sm:$0xff] }
 0x1f8   : > { %v695_v40 = vadd.f32 %v1631_v47, %v694_v22  ;;  %v1733_v49 = vadd.f32 %v692_v45, %v1605_v35 }
 0x1f9   : > { %800 = vadd.xlane.f32.xlu1 %v777_v48  ;;  %v1720_v39 = vadd.f32 %v703_v33, %v1609_v43 }
 0x1fa   : > { %798 = vadd.xlane.f32.xlu0 %v776_v23  ;;  %v1730_v46 = vadd.f32 %v695_v40, %v1616_v54  ;;  %v782_v43 = vmul.f32 %v1733_v49, %v1733_v49  ;;  %v784_v54 = vmul.f32 %v1724_v42, %v1724_v42 }
 0x1fb   : > { %v785_v47 = vmul.f32 %v1720_v39, %v1720_v39 }
 0x1fc   : > { %v783_v27 = vmul.f32 %v1730_v46, %v1730_v46 }
 0x1fd   : > { %796 = vadd.xlane.f32.xlu1 %v775_v50 }
 0x1fe   : > { %794 = vadd.xlane.f32.xlu0 %v774_v25 }
 0x201   : > { %744 = vadd.xlane.f32.xlu1 %v1692_v26 }
 0x202   : > { %742 = vadd.xlane.f32.xlu0 %v1696_v29 }
 0x205   : > { %740 = vadd.xlane.f32.xlu1 %v1702_v31 }
 0x206   : > { %738 = vadd.xlane.f32.xlu0 %v1705_v32 }
 0x209   : > { %808 = vadd.xlane.f32.xlu1 %v781_v63 }
 0x20a   : > { %806 = vadd.xlane.f32.xlu0 %v780_v6 }
 0x20d   : > { %804 = vadd.xlane.f32.xlu1 %v779_v13 }
 0x20e   : > { %802 = vadd.xlane.f32.xlu0 %v778_v37 }
 0x211   : > { %752 = vadd.xlane.f32.xlu1 %v1720_v39 }
 0x212   : > { %750 = vadd.xlane.f32.xlu0 %v1724_v42 }
 0x215   : > { %748 = vadd.xlane.f32.xlu1 %v1730_v46 }
 0x216   : > { %746 = vadd.xlane.f32.xlu0 %v1733_v49 }
 0x219   : > { %812 = vadd.xlane.f32.xlu1 %v783_v27 }
 0x21a   : > { %810 = vadd.xlane.f32.xlu0 %v782_v43 }
 0x21d   : > { %816 = vadd.xlane.f32.xlu1 %v785_v47 }
 0x21e   : > { %814 = vadd.xlane.f32.xlu0 %v784_v54 }
 0x26e   : > { %v727_v35 = vpop.xlane.xlu1 %726 }
 0x26f   : > { %v723_v51 = vpop.xlane.xlu0 %722  ;;  %v756_v52 = vmul.f32 0.015625, %v727_v35 }
 0x270   : > { %v1745_v5 = vmul.f32 0.015625, %v723_v51 }
 0x271   : > { %v836_v60 = vmul.f32 %v756_v52, %v756_v52  ;;  %v884_v33 = vsub.f32 %v1636_v58, %v756_v52  ;;  %v1774_v58 = vld [vmem:[%s1942_s6] ss:$0 sm:$0xff] }
 0x272   : > { %v729_v55 = vpop.xlane.xlu1 %728  ;;  %v834_v17 = vmul.f32 %v1745_v5, %v1745_v5 }
 0x273   : > { %v757_v57 = vmul.f32 0.015625, %v729_v55  ;;  %v791_v59 = vpop.xlane.xlu0 %790 }
 0x274   : > { %v820_v62 = vmul.f32 0.015625, %v791_v59 }
 0x275   : > { %v837_v4 = vmul.f32 %v757_v57, %v757_v57  ;;  %v885_v54 = vsub.f32 %v1645_v0, %v757_v57 }
 0x276   : > { %v852_v1 = vsub.f32 %v820_v62, %v836_v60  ;;  %v793_v2 = vpop.xlane.xlu1 %792 }
 0x277   : > { %v821_v36 = vmul.f32 0.015625, %v793_v2  ;;  %v725_v34 = vpop.xlane.xlu0 %724 }
 0x278   : > { %v868_v41 = vmax.f32 %v852_v1, 0.0  ;;  %v1747_v7 = vmul.f32 0.015625, %v725_v34 }
 0x279   : > { %v853_v8 = vsub.f32 %v821_v36, %v837_v4 }
 0x27a   : > { %v900_v9 = vadd.f32 1e-05, %v868_v41  ;;  %v835_v10 = vmul.f32 %v1747_v7, %v1747_v7  ;;  %v789_v11 = vpop.xlane.xlu1 %788  ;;  %v883_v1 = vsub.f32 %v1652_v38, %v1747_v7  ;;  %v882_v38 = vsub.f32 %v1640_v61, %v1745_v5 }
 0x27b   : > { %v869_v44 = vmax.f32 %v853_v8, 0.0  ;;  %v819_v12 = vmul.f32 0.015625, %v789_v11  ;;  %v787_v15 = vpop.xlane.xlu0 %786 }
 0x27c   : > { %1296 = vrsqrt.f32 %v900_v9  ;;  %v818_v18 = vmul.f32 0.015625, %v787_v15 }
 0x27d   : > { %v901_v20 = vadd.f32 1e-05, %v869_v44  ;;  %v851_v53 = vsub.f32 %v819_v12, %v835_v10 }
 0x27e   : > { %v850_v22 = vsub.f32 %v818_v18, %v834_v17  ;;  %v737_v48 = vpop.xlane.xlu1 %736 }
 0x27f   : > { %1298 = vrsqrt.f32 %v901_v20  ;;  %v867_v23 = vmax.f32 %v851_v53, 0.0  ;;  %v735_v56 = vpop.xlane.xlu0 %734  ;;  %v1753_v30 = vmul.f32 0.015625, %v737_v48 }
 0x280   : > { %v866_v50 = vmax.f32 %v850_v22, 0.0  ;;  %v1756_v6 = vmul.f32 0.015625, %v735_v56 }
 0x281   : > { %v899_v24 = vadd.f32 1e-05, %v867_v23  ;;  %v841_v45 = vmul.f32 %v1753_v30, %v1753_v30 }
 0x282   : > { %v898_v25 = vadd.f32 1e-05, %v866_v50  ;;  %v733_v28 = vpop.xlane.xlu1 %732  ;;  %v840_v35 = vmul.f32 %v1756_v6, %v1756_v6 }
 0x283   : > { %1300 = vrsqrt.f32 %v899_v24  ;;  %v731_v63 = vpop.xlane.xlu0 %730  ;;  %v1768_v27 = vmul.f32 0.015625, %v733_v28 }
 0x284   : > { %1302 = vrsqrt.f32 %v898_v25  ;;  %v1778_v51 = vmul.f32 0.015625, %v731_v63 }
 0x285   : > { %v839_v4 = vmul.f32 %v1768_v27, %v1768_v27 }
 0x286   : > { %v1297_v13 = vpop.eup %1296  ;;  %v801_v37 = vpop.xlane.xlu1 %800  ;;  %v838_v9 = vmul.f32 %v1778_v51, %v1778_v51 }
 0x287   : > { %v932_v40 = vmul.f32 %v1297_v13, %v884_v33  ;;  %v825_v43 = vmul.f32 0.015625, %v801_v37  ;;  %v799_v47 = vpop.xlane.xlu0 %798 }
 0x288   : > { %v824_v52 = vmul.f32 0.015625, %v799_v47 }
 0x289   : > { %v1299_v55 = vpop.eup %1298  ;;  %v955_v59 = vmul.f32 %v1762_v3, %v932_v40  ;;  %v857_v60 = vsub.f32 %v825_v43, %v841_v45 }
 0x28a   : > { %v933_v62 = vmul.f32 %v1299_v55, %v885_v54  ;;  %v856_v0 = vsub.f32 %v824_v52, %v840_v35  ;;  %v797_v57 = vpop.xlane.xlu1 %796  ;;  %v889_v52 = vsub.f32 %v1664_v14, %v1753_v30 }
 0x28b   : > { %v978_v2 = vadd.f32 %v1774_v58, %v955_v59  ;;  %v873_v36 = vmax.f32 %v857_v60, 0.0  ;;  %v823_v34 = vmul.f32 0.015625, %v797_v57  ;;  %v795_v41 = vpop.xlane.xlu0 %794 }
 0x28c   : > { %v956_v8 = vmul.f32 %v1762_v3, %v933_v62  ;;  %v872_v10 = vmax.f32 %v856_v0, 0.0  ;;  %v822_v11 = vmul.f32 0.015625, %v795_v41 }
 0x28d   : > { %v1301_v44 = vpop.eup %1300  ;;  %994 = vst [vmem:[%s1791_s20 + $0x10] sm:$0xff] %v978_v2  ;;  %v905_v7 = vadd.f32 1e-05, %v873_v36  ;;  %v855_v12 = vsub.f32 %v823_v34, %v839_v4  ;;  %v887_v2 = vsub.f32 %v1674_v19, %v1768_v27  ;;  %v886_v19 = vsub.f32 %v1677_v21, %v1778_v51 }
 0x28e   : > { %v1303_v15 = vpop.eup %1302  ;;  %v979_v17 = vadd.f32 %v1774_v58, %v956_v8  ;;  %v931_v18 = vmul.f32 %v1301_v44, %v883_v1  ;;  %v904_v20 = vadd.f32 1e-05, %v872_v10  ;;  %v854_v53 = vsub.f32 %v822_v11, %v838_v9  ;;  %v745_v22 = vpop.xlane.xlu1 %744 }
 0x28f   : > { %v930_v48 = vmul.f32 %v1303_v15, %v882_v38  ;;  %1304 = vrsqrt.f32 %v905_v7  ;;  %v871_v23 = vmax.f32 %v855_v12, 0.0  ;;  %v743_v56 = vpop.xlane.xlu0 %742  ;;  %v1800_v13 = vmul.f32 0.015625, %v745_v22 }
 0x290   : > { %995 = vst [vmem:[%s1791_s20 + $0x18] sm:$0xff] %v979_v17  ;;  %v954_v61 = vmul.f32 %v1762_v3, %v931_v18  ;;  %1306 = vrsqrt.f32 %v904_v20  ;;  %v870_v5 = vmax.f32 %v854_v53, 0.0  ;;  %v1803_v40 = vmul.f32 0.015625, %v743_v56 }
 0x291   : > { %v953_v50 = vmul.f32 %v1762_v3, %v930_v48  ;;  %v903_v24 = vadd.f32 1e-05, %v871_v23  ;;  %v845_v43 = vmul.f32 %v1800_v13, %v1800_v13  ;;  %v888_v1 = vsub.f32 %v1668_v16, %v1756_v6 }
 0x292   : > { %v977_v25 = vadd.f32 %v1774_v58, %v954_v61  ;;  %v902_v28 = vadd.f32 1e-05, %v870_v5  ;;  %v741_v63 = vpop.xlane.xlu1 %740  ;;  %v844_v55 = vmul.f32 %v1803_v40, %v1803_v40 }
 0x293   : > { %v976_v33 = vadd.f32 %v1774_v58, %v953_v50  ;;  %1308 = vrsqrt.f32 %v903_v24  ;;  %v739_v37 = vpop.xlane.xlu0 %738  ;;  %v1808_v47 = vmul.f32 0.015625, %v741_v63 }
 0x294   : > { %993 = vst [vmem:[%s1791_s20 + $0x8] sm:$0xff] %v977_v25  ;;  %1310 = vrsqrt.f32 %v902_v28  ;;  %v1814_v59 = vmul.f32 0.015625, %v739_v37 }
 0x295   : > { %992 = vst [vmem:[%s1791_s20] sm:$0xff] %v976_v33  ;;  %v843_v14 = vmul.f32 %v1808_v47, %v1808_v47 }
 0x296   : > { %v809_v45 = vpop.xlane.xlu1 %808  ;;  %v842_v16 = vmul.f32 %v1814_v59, %v1814_v59 }
 0x297   : > { %v829_v54 = vmul.f32 0.015625, %v809_v45  ;;  %v807_v35 = vpop.xlane.xlu0 %806 }
 0x298   : > { %v828_v60 = vmul.f32 0.015625, %v807_v35 }
 0x299   : > { %v1305_v62 = vpop.eup %1304  ;;  %v861_v0 = vsub.f32 %v829_v54, %v845_v43 }
 0x29a   : > { %v1307_v57 = vpop.eup %1306  ;;  %v937_v4 = vmul.f32 %v1305_v62, %v889_v52  ;;  %v860_v36 = vsub.f32 %v828_v60, %v844_v55  ;;  %v805_v34 = vpop.xlane.xlu1 %804  ;;  %v893_v55 = vsub.f32 %v1692_v26, %v1800_v13 }
 0x29b   : > { %v936_v41 = vmul.f32 %v1307_v57, %v888_v1  ;;  %v877_v30 = vmax.f32 %v861_v0, 0.0  ;;  %v827_v8 = vmul.f32 0.015625, %v805_v34  ;;  %v803_v9 = vpop.xlane.xlu0 %802  ;;  %v892_v57 = vsub.f32 %v1696_v29, %v1803_v40 }
 0x29c   : > { %v960_v10 = vmul.f32 %v1762_v3, %v937_v4  ;;  %v876_v6 = vmax.f32 %v860_v36, 0.0  ;;  %v826_v11 = vmul.f32 0.015625, %v803_v9  ;;  %v891_v36 = vsub.f32 %v1702_v31, %v1808_v47 }
 0x29d   : > { %v1309_v44 = vpop.eup %1308  ;;  %v959_v27 = vmul.f32 %v1762_v3, %v936_v41  ;;  %v909_v38 = vadd.f32 1e-05, %v877_v30  ;;  %v859_v7 = vsub.f32 %v827_v8, %v843_v14  ;;  %v890_v31 = vsub.f32 %v1705_v32, %v1814_v59 }
 0x29e   : > { %v1311_v12 = vpop.eup %1310  ;;  %v983_v15 = vadd.f32 %v1774_v58, %v960_v10  ;;  %v935_v17 = vmul.f32 %v1309_v44, %v887_v2  ;;  %v908_v18 = vadd.f32 1e-05, %v876_v6  ;;  %v858_v20 = vsub.f32 %v826_v11, %v842_v16  ;;  %v753_v53 = vpop.xlane.xlu1 %752 }
 0x29f   : > { %v982_v22 = vadd.f32 %v1774_v58, %v959_v27  ;;  %v934_v48 = vmul.f32 %v1311_v12, %v886_v19  ;;  %1312 = vrsqrt.f32 %v909_v38  ;;  %v875_v23 = vmax.f32 %v859_v7, 0.0  ;;  %v751_v56 = vpop.xlane.xlu0 %750 }
 0x2a0   : > { %999 = vst [vmem:[%s1791_s20 + $0x38] sm:$0xff] %v983_v15  ;;  %v958_v21 = vmul.f32 %v1762_v3, %v935_v17  ;;  %1314 = vrsqrt.f32 %v908_v18  ;;  %v874_v51 = vmax.f32 %v858_v20, 0.0  ;;  %v1838_v43 = vmul.f32 0.015625, %v753_v53 }
 0x2a1   : > { %998 = vst [vmem:[%s1791_s20 + $0x30] sm:$0xff] %v982_v22  ;;  %v957_v61 = vmul.f32 %v1762_v3, %v934_v48  ;;  %v907_v5 = vadd.f32 1e-05, %v875_v23  ;;  %v1842_v60 = vmul.f32 0.015625, %v751_v56 }
 0x2a2   : > { %v981_v50 = vadd.f32 %v1774_v58, %v958_v21  ;;  %v906_v24 = vadd.f32 1e-05, %v874_v51  ;;  %v749_v25 = vpop.xlane.xlu1 %748  ;;  %v849_v26 = vmul.f32 %v1838_v43, %v1838_v43 }
 0x2a3   : > { %v980_v28 = vadd.f32 %v1774_v58, %v957_v61  ;;  %1316 = vrsqrt.f32 %v907_v5  ;;  %v747_v63 = vpop.xlane.xlu0 %746  ;;  %v767_v33 = vmul.f32 0.015625, %v749_v25  ;;  %v848_v29 = vmul.f32 %v1842_v60, %v1842_v60 }
 0x2a4   : > { %997 = vst [vmem:[%s1791_s20 + $0x28] sm:$0xff] %v981_v50  ;;  %1318 = vrsqrt.f32 %v906_v24  ;;  %v766_v37 = vmul.f32 0.015625, %v747_v63  ;;  %v897_v24 = vsub.f32 %v1720_v39, %v1838_v43  ;;  %v896_v63 = vsub.f32 %v1724_v42, %v1842_v60 }
 0x2a5   : > { %996 = vst [vmem:[%s1791_s20 + $0x20] sm:$0xff] %v980_v28  ;;  %v847_v54 = vmul.f32 %v767_v33, %v767_v33  ;;  %v895_v56 = vsub.f32 %v1730_v46, %v767_v33 }
 0x2a6   : > { %v813_v45 = vpop.xlane.xlu1 %812  ;;  %v846_v62 = vmul.f32 %v766_v37, %v766_v37  ;;  %v894_v51 = vsub.f32 %v1733_v49, %v766_v37 }
 0x2a7   : > { %v831_v35 = vmul.f32 0.015625, %v813_v45  ;;  %v811_v52 = vpop.xlane.xlu0 %810 }
 0x2a8   : > { %v830_v1 = vmul.f32 0.015625, %v811_v52 }
 0x2a9   : > { %v1313_v0 = vpop.eup %1312  ;;  %v863_v2 = vsub.f32 %v831_v35, %v847_v54 }
 0x2aa   : > { %v1315_v4 = vpop.eup %1314  ;;  %v941_v34 = vmul.f32 %v1313_v0, %v893_v55  ;;  %v862_v41 = vsub.f32 %v830_v1, %v846_v62  ;;  %v817_v14 = vpop.xlane.xlu1 %816 }
 0x2ab   : > { %v940_v30 = vmul.f32 %v1315_v4, %v892_v57  ;;  %v879_v13 = vmax.f32 %v863_v2, 0.0  ;;  %v833_v8 = vmul.f32 0.015625, %v817_v14  ;;  %v815_v9 = vpop.xlane.xlu0 %814 }
 0x2ac   : > { %v964_v10 = vmul.f32 %v1762_v3, %v941_v34  ;;  %v878_v40 = vmax.f32 %v862_v41, 0.0  ;;  %v832_v16 = vmul.f32 0.015625, %v815_v9 }
 0x2ad   : > { %v1317_v6 = vpop.eup %1316  ;;  %v963_v47 = vmul.f32 %v1762_v3, %v940_v30  ;;  %v911_v11 = vadd.f32 1e-05, %v879_v13  ;;  %v865_v44 = vsub.f32 %v833_v8, %v849_v26 }
 0x2ae   : > { %v1319_v19 = vpop.eup %1318  ;;  %v987_v27 = vadd.f32 %v1774_v58, %v964_v10  ;;  %v939_v38 = vmul.f32 %v1317_v6, %v891_v36  ;;  %v910_v7 = vadd.f32 1e-05, %v878_v40  ;;  %v864_v12 = vsub.f32 %v832_v16, %v848_v29 }
 0x2af   : > { %v986_v15 = vadd.f32 %v1774_v58, %v963_v47  ;;  %v938_v17 = vmul.f32 %v1319_v19, %v890_v31  ;;  %1320 = vrsqrt.f32 %v911_v11  ;;  %v881_v18 = vmax.f32 %v865_v44, 0.0 }
 0x2b0   : > { %1003 = vst [vmem:[%s1791_s20 + $0x58] sm:$0xff] %v987_v27  ;;  %v962_v32 = vmul.f32 %v1762_v3, %v939_v38  ;;  %1322 = vrsqrt.f32 %v910_v7  ;;  %v880_v59 = vmax.f32 %v864_v12, 0.0 }
 0x2b1   : > { %1002 = vst [vmem:[%s1791_s20 + $0x50] sm:$0xff] %v986_v15  ;;  %v961_v20 = vmul.f32 %v1762_v3, %v938_v17  ;;  %v913_v53 = vadd.f32 1e-05, %v881_v18 }
 0x2b2   : > { %v985_v22 = vadd.f32 %v1774_v58, %v962_v32  ;;  %v912_v48 = vadd.f32 1e-05, %v880_v59 }
 0x2b3   : > { %v984_v23 = vadd.f32 %v1774_v58, %v961_v20  ;;  %1324 = vrsqrt.f32 %v913_v53 }
 0x2b4   : > { %1001 = vst [vmem:[%s1791_s20 + $0x48] sm:$0xff] %v985_v22  ;;  %1326 = vrsqrt.f32 %v912_v48 }
 0x2b5   : > { %1000 = vst [vmem:[%s1791_s20 + $0x40] sm:$0xff] %v984_v23 }
 0x2b9   : > { %v1321_v21 = vpop.eup %1320 }
 0x2ba   : > { %v1323_v61 = vpop.eup %1322  ;;  %v943_v5 = vmul.f32 %v1321_v21, %v895_v56 }
 0x2bb   : > { %v942_v50 = vmul.f32 %v1323_v61, %v894_v51 }
 0x2bc   : > { %v966_v25 = vmul.f32 %v1762_v3, %v943_v5 }
 0x2bd   : > { %v1325_v28 = vpop.eup %1324  ;;  %v965_v46 = vmul.f32 %v1762_v3, %v942_v50 }
 0x2be   : > { %v1327_v33 = vpop.eup %1326  ;;  %v989_v49 = vadd.f32 %v1774_v58, %v966_v25  ;;  %v945_v37 = vmul.f32 %v1325_v28, %v897_v24 }
 0x2bf   : > { %v988_v45 = vadd.f32 %v1774_v58, %v965_v46  ;;  %v944_v54 = vmul.f32 %v1327_v33, %v896_v63 }
 0x2c0   : > { %1005 = vst [vmem:[%s1791_s20 + $0x68] sm:$0xff] %v989_v49  ;;  %v968_v39 = vmul.f32 %v1762_v3, %v945_v37 }
 0x2c1   : > { %1004 = vst [vmem:[%s1791_s20 + $0x60] sm:$0xff] %v988_v45  ;;  %v967_v42 = vmul.f32 %v1762_v3, %v944_v54 }
 0x2c2   : > { %v991_v43 = vadd.f32 %v1774_v58, %v968_v39 }
 0x2c3   : > { %v990_v35 = vadd.f32 %v1774_v58, %v967_v42 }
 0x2c4   : > { %1007 = vst [vmem:[%s1791_s20 + $0x78] sm:$0xff] %v991_v43 }
 0x2c5   : > { %1006 = vst [vmem:[%s1791_s20 + $0x70] sm:$0xff] %v990_v35 }
 0x2c6   : > { %1341 = shalt.err (!%p1338_p3)
}
 0x2c7   : > { %s1342_s14 = scalar_lea.hbm %s1886_s8, 2048  ;;  %s1346_s19 = scalar_lea.hbm %s1943_s7, 4096 }
 0x2c8   : > { %p1343_p4 = scmp.ne.s32.totalorder %s1886_s8, %s1342_s14  ;;  %p1347_p9 = scmp.lt.u32.totalorder %s1886_s8, %s1943_s7 }
 0x2c9   : > { %p1348_p10 = scmp.lt.u32.totalorder %s1346_s19, %s1342_s14  ;;  %p1350_p12 = scmp.lt.u32.totalorder %s1342_s14, %s1886_s8 }
 0x2ca   : > { %p1344_p7 = pnand %p1343_p4, %p1473_p5 }
 0x2cb   : > { %p1349_p11 = por %p1348_p10, %p1347_p9 }
 0x2cc   : > { %p1345_p8 = pneg %p1344_p7 }
 0x2cd   : > { %p1351_p13 = por %p1350_p12, %p1349_p11 }
 0x2cf   : > { %p1352_p0 = pnand %p1351_p13, %p1345_p8 }
 0x2d1   : > { %1355 = shalt.err (!%p1352_p0)
}
 0x2d2   : > { %s1393_s23 = smov 128   ;;  %s1394_s29 = smov 8  }
 0x2d3   : > { %1213 = dma.vmem_to_hbm [thread:$0]  (%p1473_p5), %s1888_s22, 2048, %s1886_s8, %s1895_s28, %s1393_s23, %s1393_s23, %s1394_s29  }
 0x2d4 PF: > { %p1219_p1 = scmp.ge.s32.totalorder %s1390_s27, 2  ;;  %s1037_s9 = sand.u32 1, %s1378_s24  }
 0x2d5   : > { %s1038_s13 = scalar_lea.sflag [#allocation3], %s1037_s9 }
 0x2d6   : > { %p1216_p2 = pnand %p1219_p1, %p1477_p6 }
 0x2d8   : > { %1373 = dma.done.wait (!%p1216_p2), %s1038_s13, 2048  }
 0x2d9   : > { %1375 = vsyncadd (!%p1216_p2), %s1038_s13, 4294965248  ;;  %p17_p3 = scmp.ge.s32.totalorder %s1460_s30, 4   ;;  %s1946_s24 = smov %s1382_s25 }
 0x2da   : > { %s1947_s25 = smov %s1386_s26  ;;  %s1948_s26 = smov %s1471_s10 }
 0x2db   : > { %s1949_s27 = smov %s1460_s30  ;;  %19 = sbr.rel (!%p17_p3) target bundleno = 3 (0x3), region = 83 }
 0x2e2   :  { %1043 = vsyncpa [#allocation3], 1 }
 0x2e3   :  { %1045 = vsyncpa [#allocation3 + $0x1], 1 }

</bundles_post_ra>
